<compile_context>
chip_gen: v5e
topology: v5e:2x2
jax: 0.10.0
libtpu: 0.0.40
codegen_flags: <defaults>
</compile_context>

<pallas_src>
import math
import functools

import jax
import jax.numpy as jnp
from jax.experimental import pallas as pl
from jax.experimental.pallas import tpu as pltpu


# ----------------------------------------------------------------------------
# In-kernel helpers
# ----------------------------------------------------------------------------
def _layer_norm(x, g, b, eps=1e-5):
    # x: (S, D), g/b: (1, D).  PyTorch LayerNorm: biased variance, eps=1e-5.
    mu = jnp.mean(x, axis=-1, keepdims=True)
    var = jnp.mean((x - mu) ** 2, axis=-1, keepdims=True)
    return (x - mu) * jax.lax.rsqrt(var + eps) * g + b


# ----------------------------------------------------------------------------
# Fused forward kernel (embedding -> L encoder layers -> mean -> out linear)
# Grid = (batch, layer); one batch element per grid point along axis 0.
# ----------------------------------------------------------------------------
def _fused_forward_kernel(x_ref, ew_ref, eb_ref, pe_ref,
                          wqkv_ref, bqkv_ref, wo_ref, bo_ref,
                          g1_ref, be1_ref, g2_ref, be2_ref,
                          w1_ref, b1_ref, w2_ref, b2_ref,
                          ow_ref, ob_ref,
                          o_ref, act_ref, *, n_head):
    layer = pl.program_id(1)
    n_layers = pl.num_programs(1)

    # ---- layer 0: input embedding + positional encoding (fused) ------------
    @pl.when(layer == 0)
    def _embed():
        y = jnp.dot(x_ref[0], ew_ref[...], preferred_element_type=jnp.float32)
        act_ref[...] = y + eb_ref[...] + pe_ref[...]

    x = act_ref[...]                          # (S, D) f32 resident activation
    S, D = x.shape
    H = n_head
    dk = D // H

    # ---- pre-norm multi-head attention (single fused QKV matmul) -----------
    xn1 = _layer_norm(x, g1_ref[0], be1_ref[0])
    qkv = jnp.dot(xn1.astype(wqkv_ref.dtype), wqkv_ref[0],
                  preferred_element_type=jnp.float32) + bqkv_ref[0]   # (S, 3D)
    # Split heads: (S, D) -> (H, S, dk).  1/sqrt(dk) is folded into W_Q.
    q = jnp.transpose(qkv[:, 0 * D:1 * D].reshape(S, H, dk), (1, 0, 2))
    k = jnp.transpose(qkv[:, 1 * D:2 * D].reshape(S, H, dk), (1, 0, 2))
    v = jnp.transpose(qkv[:, 2 * D:3 * D].reshape(S, H, dk), (1, 0, 2))

    s = jnp.einsum('hqd,hkd->hqk', q, k,
                   preferred_element_type=jnp.float32)                # (H, S, S)
    m = jnp.max(s, axis=-1, keepdims=True)
    e = jnp.exp(s - m)
    p = e * pl.reciprocal(jnp.sum(e, axis=-1, keepdims=True), approx=True)
    a = jnp.einsum('hqk,hkd->hqd', p, v,
                   preferred_element_type=jnp.float32)                # (H, S, dk)

    # Concat heads -> (S, D), one lane-dense output projection.
    a2 = jnp.transpose(a, (1, 0, 2)).reshape(S, D)
    attn = jnp.dot(a2.astype(wo_ref.dtype), wo_ref[0],
                   preferred_element_type=jnp.float32) + bo_ref[0]
    x = x + attn

    # ---- pre-norm feed-forward ----------------------------------------------
    xn2 = _layer_norm(x, g2_ref[0], be2_ref[0])
    h1 = jnp.dot(xn2.astype(w1_ref.dtype), w1_ref[0],
                 preferred_element_type=jnp.float32) + b1_ref[0]
    h1 = jnp.maximum(h1, 0.0)
    ffn = jnp.dot(h1.astype(w2_ref.dtype), w2_ref[0],
                  preferred_element_type=jnp.float32) + b2_ref[0]
    x = x + ffn

    act_ref[...] = x

    # ---- last layer: mean over sequence + output projection ----------------
    @pl.when(layer == n_layers - 1)
    def _head():
        pooled = jnp.mean(x, axis=0, keepdims=True)                   # (1, D)
        o_ref[0] = (jnp.dot(pooled, ow_ref[...],
                            preferred_element_type=jnp.float32) + ob_ref[...])


# ----------------------------------------------------------------------------
# pallas_call wrapper
# ----------------------------------------------------------------------------
def _inv_spec(a):
    zeros = (0,) * a.ndim
    return pl.BlockSpec(a.shape, lambda b, l, z=zeros: z)


def _layer_spec(a):
    tail = (0,) * (a.ndim - 1)
    return pl.BlockSpec((1,) + a.shape[1:], lambda b, l, t=tail: (l,) + t)


def base_transformer_forward(x, params, *, n_head):
    # TODO(synk): PatchEmbedding (4-D input path) class not provided in the
    # reference; only the 3-D / nn.Linear embedding path is implemented.
    B, S, d_in = x.shape
    D = params["emb_w"].shape[1]
    L = params["wqkv"].shape[0]
    d_out = params["out_w"].shape[1]
    assert D % n_head == 0

    invariant_head = [params["emb_w"], params["emb_b"], params["pe"]]
    stacked_names = ["wqkv", "bqkv", "wo", "bo", "g1", "be1", "g2", "be2",
                     "w1", "b1", "w2", "b2"]
    stacked = [params[n] for n in stacked_names]
    tail = [params["out_w"], params["out_b"]]

    args = [x] + invariant_head + stacked + tail
    in_specs = ([pl.BlockSpec((1, S, d_in), lambda b, l: (b, 0, 0))]
                + [_inv_spec(a) for a in invariant_head]
                + [_layer_spec(a) for a in stacked]
                + [_inv_spec(a) for a in tail])

    # VMEM budget: double-buffered blocks + resident activation + headroom.
    def _block_nbytes(a, leading_tiles):
        return (a.size // leading_tiles) * a.dtype.itemsize
    block_bytes = (_block_nbytes(x, B)
                   + sum(_block_nbytes(a, 1) for a in invariant_head + tail)
                   + sum(_block_nbytes(a, L) for a in stacked))
    scratch_bytes = S * D * 4
    vmem_limit = int(min(64 * 1024 * 1024,
                         2 * block_bytes + scratch_bytes + (8 << 20)))

    out3 = pl.pallas_call(
        functools.partial(_fused_forward_kernel, n_head=n_head),
        out_shape=jax.ShapeDtypeStruct((B, 1, d_out), jnp.float32),
        grid=(B, L),
        in_specs=in_specs,
        out_specs=pl.BlockSpec((1, 1, d_out), lambda b, l: (b, 0, 0)),
        scratch_shapes=[pltpu.VMEM((S, D), jnp.float32)],
        compiler_params=pltpu.CompilerParams(
            dimension_semantics=("parallel", "arbitrary"),
            vmem_limit_bytes=vmem_limit),
    )(*args)
    return out3.reshape(B, d_out)


# ----------------------------------------------------------------------------
# Parameter construction (matches nn.Module init: xavier weights, zero biases)
# ----------------------------------------------------------------------------
def _xavier(key, fan_in, fan_out):
    bound = math.sqrt(6.0 / (fan_in + fan_out))
    return jax.random.uniform(key, (fan_in, fan_out), jnp.float32, -bound, bound)


def _sinusoidal_pe(S, D):
    # TODO(synk): PositionalEncoding class not given in the reference; standard
    # additive sinusoidal PE (dropout = identity) is assumed.
    pos = jnp.arange(S, dtype=jnp.float32)[:, None]
    i = jnp.arange(0, D, 2, dtype=jnp.float32)[None, :]
    angle = pos / jnp.power(10000.0, i / D)
    pe = jnp.zeros((S, D), jnp.float32)
    pe = pe.at[:, 0::2].set(jnp.sin(angle))
    pe = pe.at[:, 1::2].set(jnp.cos(angle))
    return pe


def init_base_transformer_params(key, *, d_model, n_head, d_ffn,
                                 num_encoder_layers, d_input, d_output,
                                 seq_len):
    D, F, H, L = d_model, d_ffn, n_head, num_encoder_layers
    dk = D // H
    scale = 1.0 / math.sqrt(dk)
    keys = jax.random.split(key, 2 + 6 * L)
    kit = iter(keys)

    emb_w = _xavier(next(kit), d_input, D)

    wqkv_l, wo_l, w1_l, w2_l = [], [], [], []
    for _ in range(L):
        wq = _xavier(next(kit), D, D) * scale     # fold 1/sqrt(dk) into W_Q
        wk = _xavier(next(kit), D, D)
        wv = _xavier(next(kit), D, D)
        wqkv_l.append(jnp.concatenate([wq, wk, wv], axis=1))   # (D, 3D)
        wo_l.append(_xavier(next(kit), D, D))
        w1_l.append(_xavier(next(kit), D, F))
        w2_l.append(_xavier(next(kit), F, D))
    out_w = _xavier(next(kit), D, d_output)

    wdt = jnp.bfloat16   # streamed per-layer weights in bf16, f32 accumulation
    return {
        "emb_w": emb_w,
        "emb_b": jnp.zeros((1, D), jnp.float32),
        "pe": _sinusoidal_pe(seq_len, D),
        "wqkv": jnp.stack(wqkv_l).astype(wdt),
        "bqkv": jnp.zeros((L, 1, 3 * D), jnp.float32),
        "wo": jnp.stack(wo_l).astype(wdt),
        "bo": jnp.zeros((L, 1, D), jnp.float32),
        "g1": jnp.ones((L, 1, D), jnp.float32),
        "be1": jnp.zeros((L, 1, D), jnp.float32),
        "g2": jnp.ones((L, 1, D), jnp.float32),
        "be2": jnp.zeros((L, 1, D), jnp.float32),
        "w1": jnp.stack(w1_l).astype(wdt),
        "b1": jnp.zeros((L, 1, F), jnp.float32),
        "w2": jnp.stack(w2_l).astype(wdt),
        "b2": jnp.zeros((L, 1, D), jnp.float32),
        "out_w": out_w,
        "out_b": jnp.zeros((1, d_output), jnp.float32),
    }


# ----------------------------------------------------------------------------
if __name__ == "__main__":
    d_model, n_head, d_ffn = 32, 4, 64
    num_encoder_layers = 2
    d_input, d_output = 8, 10
    B, S = 2, 8

    key = jax.random.PRNGKey(0)
    k_param, k_x = jax.random.split(key)
    params = init_base_transformer_params(
        k_param, d_model=d_model, n_head=n_head, d_ffn=d_ffn,
        num_encoder_layers=num_encoder_layers, d_input=d_input,
        d_output=d_output, seq_len=S)

    x = jax.random.normal(k_x, (B, S, d_input), jnp.float32)

    out = base_transformer_forward(x, params, n_head=n_head)
    out = jax.block_until_ready(out)
    assert out.shape == (B, d_output), out.shape
    print("KERNEL_OK")
</pallas_src>

<mosaic_0001>
module attributes {stable_mosaic.version = 11 : i64} {
  func.func @_fused_forward_kernel(%arg0: i32, %arg1: i32, %arg2: memref<1x8x8xf32, #tpu.memory_space<vmem>>, %arg3: memref<8x32xf32, #tpu.memory_space<vmem>>, %arg4: memref<1x32xf32, #tpu.memory_space<vmem>>, %arg5: memref<8x32xf32, #tpu.memory_space<vmem>>, %arg6: memref<1x32x96xbf16, #tpu.memory_space<vmem>>, %arg7: memref<1x1x96xf32, #tpu.memory_space<vmem>>, %arg8: memref<1x32x32xbf16, #tpu.memory_space<vmem>>, %arg9: memref<1x1x32xf32, #tpu.memory_space<vmem>>, %arg10: memref<1x1x32xf32, #tpu.memory_space<vmem>>, %arg11: memref<1x1x32xf32, #tpu.memory_space<vmem>>, %arg12: memref<1x1x32xf32, #tpu.memory_space<vmem>>, %arg13: memref<1x1x32xf32, #tpu.memory_space<vmem>>, %arg14: memref<1x32x64xbf16, #tpu.memory_space<vmem>>, %arg15: memref<1x1x64xf32, #tpu.memory_space<vmem>>, %arg16: memref<1x64x32xbf16, #tpu.memory_space<vmem>>, %arg17: memref<1x1x32xf32, #tpu.memory_space<vmem>>, %arg18: memref<32x10xf32, #tpu.memory_space<vmem>>, %arg19: memref<1x10xf32, #tpu.memory_space<vmem>>, %arg20: memref<1x1x10xf32, #tpu.memory_space<vmem>>, %arg21: memref<8x32xf32, #tpu.memory_space<vmem>>) attributes {dimension_semantics = [#tpu.dimension_semantics<parallel>, #tpu.dimension_semantics<arbitrary>], iteration_bounds = array<i64: 2, 2>, scalar_prefetch = 0 : i64, scratch_operands = 1 : i64, tpu.core_type = #tpu.core_type<tc>, window_params = [{transform_indices = @transform_0, window_bounds = array<i64: 1, 8, 8>}, {pipeline_mode = #tpu.pipeline_mode<synchronous>, transform_indices = @transform_1, window_bounds = array<i64: 8, 32>}, {pipeline_mode = #tpu.pipeline_mode<synchronous>, transform_indices = @transform_2, window_bounds = array<i64: 1, 32>}, {pipeline_mode = #tpu.pipeline_mode<synchronous>, transform_indices = @transform_3, window_bounds = array<i64: 8, 32>}, {transform_indices = @transform_4, window_bounds = array<i64: 1, 32, 96>}, {transform_indices = @transform_5, window_bounds = array<i64: 1, 1, 96>}, {transform_indices = @transform_6, window_bounds = array<i64: 1, 32, 32>}, {transform_indices = @transform_7, window_bounds = array<i64: 1, 1, 32>}, {transform_indices = @transform_8, window_bounds = array<i64: 1, 1, 32>}, {transform_indices = @transform_9, window_bounds = array<i64: 1, 1, 32>}, {transform_indices = @transform_10, window_bounds = array<i64: 1, 1, 32>}, {transform_indices = @transform_11, window_bounds = array<i64: 1, 1, 32>}, {transform_indices = @transform_12, window_bounds = array<i64: 1, 32, 64>}, {transform_indices = @transform_13, window_bounds = array<i64: 1, 1, 64>}, {transform_indices = @transform_14, window_bounds = array<i64: 1, 64, 32>}, {transform_indices = @transform_15, window_bounds = array<i64: 1, 1, 32>}, {pipeline_mode = #tpu.pipeline_mode<synchronous>, transform_indices = @transform_16, window_bounds = array<i64: 32, 10>}, {pipeline_mode = #tpu.pipeline_mode<synchronous>, transform_indices = @transform_17, window_bounds = array<i64: 1, 10>}, {transform_indices = @transform_18, window_bounds = array<i64: 1, 1, 10>}]} {
    %c0_i32 = arith.constant 0 : i32
    %0 = arith.cmpi eq, %arg1, %c0_i32 : i32
    %1 = arith.extui %0 : i1 to i32
    %c0_i32_0 = arith.constant 0 : i32
    %2 = arith.cmpi ne, %1, %c0_i32_0 : i32
    scf.if %2 {
      %c0_59 = arith.constant 0 : index
      %c0_60 = arith.constant 0 : index
      %c0_61 = arith.constant 0 : index
      %119 = vector.load %arg2[%c0_59, %c0_60, %c0_61] : memref<1x8x8xf32, #tpu.memory_space<vmem>>, vector<1x8x8xf32>
      %120 = vector.shape_cast %119 : vector<1x8x8xf32> to vector<8x8xf32>
      %c0_62 = arith.constant 0 : index
      %c0_63 = arith.constant 0 : index
      %121 = vector.load %arg3[%c0_62, %c0_63] : memref<8x32xf32, #tpu.memory_space<vmem>>, vector<8x32xf32>
      %cst_64 = arith.constant dense<0.000000e+00> : vector<8x32xf32>
      %122 = tpu.matmul %120, %121, %cst_64 {dimension_numbers = #tpu.dot_dimension_numbers<[1], [0], [0], [1], [0, 0, 1, 1], [], []>} : vector<8x8xf32>, vector<8x32xf32>, vector<8x32xf32> -> vector<8x32xf32>
      %c0_65 = arith.constant 0 : index
      %c0_66 = arith.constant 0 : index
      %123 = vector.load %arg4[%c0_65, %c0_66] : memref<1x32xf32, #tpu.memory_space<vmem>>, vector<1x32xf32>
      %124 = vector.broadcast %123 : vector<1x32xf32> to vector<8x32xf32>
      %125 = arith.addf %122, %124 : vector<8x32xf32>
      %c0_67 = arith.constant 0 : index
      %c0_68 = arith.constant 0 : index
      %126 = vector.load %arg5[%c0_67, %c0_68] : memref<8x32xf32, #tpu.memory_space<vmem>>, vector<8x32xf32>
      %127 = arith.addf %125, %126 : vector<8x32xf32>
      %c0_69 = arith.constant 0 : index
      %c0_70 = arith.constant 0 : index
      %128 = vector.load %arg21[%c0_69, %c0_70] : memref<8x32xf32, #tpu.memory_space<vmem>>, vector<8x32xf32>
      tpu.vector_store %arg21[%c0_69, %c0_70], %127 {strides = array<i32>} : memref<8x32xf32, #tpu.memory_space<vmem>>, vector<8x32xf32>,
    } else {
    }
    %c0 = arith.constant 0 : index
    %c0_1 = arith.constant 0 : index
    %3 = vector.load %arg21[%c0, %c0_1] : memref<8x32xf32, #tpu.memory_space<vmem>>, vector<8x32xf32>
    %c0_2 = arith.constant 0 : index
    %c0_3 = arith.constant 0 : index
    %c0_4 = arith.constant 0 : index
    %4 = vector.load %arg10[%c0_2, %c0_3, %c0_4] : memref<1x1x32xf32, #tpu.memory_space<vmem>>, vector<1x1x32xf32>
    %5 = vector.shape_cast %4 : vector<1x1x32xf32> to vector<1x32xf32>
    %c0_5 = arith.constant 0 : index
    %c0_6 = arith.constant 0 : index
    %c0_7 = arith.constant 0 : index
    %6 = vector.load %arg11[%c0_5, %c0_6, %c0_7] : memref<1x1x32xf32, #tpu.memory_space<vmem>>, vector<1x1x32xf32>
    %7 = vector.shape_cast %6 : vector<1x1x32xf32> to vector<1x32xf32>
    %cst = arith.constant dense<0.000000e+00> : vector<8xf32>
    %8 = vector.multi_reduction <add>, %3, %cst [1] : vector<8x32xf32> to vector<8xf32>
    %9 = vector.shape_cast %8 : vector<8xf32> to vector<8x1xf32>
    %cst_8 = arith.constant 3.200000e+01 : f32
    %10 = vector.broadcast %cst_8 : f32 to vector<8x1xf32>
    %11 = arith.divf %9, %10 : vector<8x1xf32>
    %12 = vector.broadcast %11 : vector<8x1xf32> to vector<8x32xf32>
    %13 = arith.subf %3, %12 : vector<8x32xf32>
    %14 = arith.mulf %13, %13 : vector<8x32xf32>
    %cst_9 = arith.constant dense<0.000000e+00> : vector<8xf32>
    %15 = vector.multi_reduction <add>, %14, %cst_9 [1] : vector<8x32xf32> to vector<8xf32>
    %16 = vector.shape_cast %15 : vector<8xf32> to vector<8x1xf32>
    %cst_10 = arith.constant 3.200000e+01 : f32
    %17 = vector.broadcast %cst_10 : f32 to vector<8x1xf32>
    %18 = arith.divf %16, %17 : vector<8x1xf32>
    %19 = vector.broadcast %11 : vector<8x1xf32> to vector<8x32xf32>
    %20 = arith.subf %3, %19 : vector<8x32xf32>
    %cst_11 = arith.constant 9.99999974E-6 : f32
    %21 = vector.broadcast %cst_11 : f32 to vector<8x1xf32>
    %22 = arith.addf %18, %21 : vector<8x1xf32>
    %23 = math.rsqrt %22 : vector<8x1xf32>
    %24 = vector.broadcast %23 : vector<8x1xf32> to vector<8x32xf32>
    %25 = arith.mulf %20, %24 : vector<8x32xf32>
    %26 = vector.broadcast %5 : vector<1x32xf32> to vector<8x32xf32>
    %27 = arith.mulf %25, %26 : vector<8x32xf32>
    %28 = vector.broadcast %7 : vector<1x32xf32> to vector<8x32xf32>
    %29 = arith.addf %27, %28 : vector<8x32xf32>
    %30 = arith.truncf %29 : vector<8x32xf32> to vector<8x32xbf16>
    %c0_12 = arith.constant 0 : index
    %c0_13 = arith.constant 0 : index
    %c0_14 = arith.constant 0 : index
    %31 = vector.load %arg6[%c0_12, %c0_13, %c0_14] : memref<1x32x96xbf16, #tpu.memory_space<vmem>>, vector<1x32x96xbf16>
    %32 = vector.shape_cast %31 : vector<1x32x96xbf16> to vector<32x96xbf16>
    %cst_15 = arith.constant dense<0.000000e+00> : vector<8x96xf32>
    %33 = tpu.matmul %30, %32, %cst_15 {dimension_numbers = #tpu.dot_dimension_numbers<[1], [0], [0], [1], [0, 0, 1, 1], [], []>} : vector<8x32xbf16>, vector<32x96xbf16>, vector<8x96xf32> -> vector<8x96xf32>
    %c0_16 = arith.constant 0 : index
    %c0_17 = arith.constant 0 : index
    %c0_18 = arith.constant 0 : index
    %34 = vector.load %arg7[%c0_16, %c0_17, %c0_18] : memref<1x1x96xf32, #tpu.memory_space<vmem>>, vector<1x1x96xf32>
    %35 = vector.shape_cast %34 : vector<1x1x96xf32> to vector<1x96xf32>
    %36 = vector.broadcast %35 : vector<1x96xf32> to vector<8x96xf32>
    %37 = arith.addf %33, %36 : vector<8x96xf32>
    %38 = vector.extract_strided_slice %37 {offsets = [0, 0], sizes = [8, 32], strides = [1, 1]} : vector<8x96xf32> to vector<8x32xf32>
    %39 = vector.shape_cast %38 : vector<8x32xf32> to vector<8x4x8xf32>
    %40 = tpu.transpose %39, [1, 0, 2] : vector<8x4x8xf32> -> vector<4x8x8xf32>
    %41 = vector.extract_strided_slice %37 {offsets = [0, 32], sizes = [8, 32], strides = [1, 1]} : vector<8x96xf32> to vector<8x32xf32>
    %42 = vector.shape_cast %41 : vector<8x32xf32> to vector<8x4x8xf32>
    %43 = tpu.transpose %42, [1, 0, 2] : vector<8x4x8xf32> -> vector<4x8x8xf32>
    %44 = vector.extract_strided_slice %37 {offsets = [0, 64], sizes = [8, 32], strides = [1, 1]} : vector<8x96xf32> to vector<8x32xf32>
    %45 = vector.shape_cast %44 : vector<8x32xf32> to vector<8x4x8xf32>
    %46 = tpu.transpose %45, [1, 0, 2] : vector<8x4x8xf32> -> vector<4x8x8xf32>
    "tpu.trace_start"() <{level = 10 : i32, message = "hqd,hkd->hqk"}> : () -> ()
    %cst_19 = arith.constant dense<0.000000e+00> : vector<4x8x8xf32>
    %47 = tpu.matmul %40, %43, %cst_19 {dimension_numbers = #tpu.dot_dimension_numbers<[2], [2], [1], [1], [0, 0, 0, 1, 1, 1], [0], [0]>} : vector<4x8x8xf32>, vector<4x8x8xf32>, vector<4x8x8xf32> -> vector<4x8x8xf32>
    "tpu.trace_stop"() : () -> ()
    %cst_20 = arith.constant dense<0xFF800000> : vector<4x8xf32>
    %48 = vector.multi_reduction <maximumf>, %47, %cst_20 [2] : vector<4x8x8xf32> to vector<4x8xf32>
    %49 = vector.shape_cast %48 : vector<4x8xf32> to vector<4x8x1xf32>
    %50 = vector.broadcast %49 : vector<4x8x1xf32> to vector<4x8x8xf32>
    %51 = arith.subf %47, %50 : vector<4x8x8xf32>
    %52 = math.exp %51 : vector<4x8x8xf32>
    %cst_21 = arith.constant dense<0.000000e+00> : vector<4x8xf32>
    %53 = vector.multi_reduction <add>, %52, %cst_21 [2] : vector<4x8x8xf32> to vector<4x8xf32>
    %54 = vector.shape_cast %53 : vector<4x8xf32> to vector<4x8x1xf32>
    %55 = tpu.reciprocal %54 {approx = true} : vector<4x8x1xf32> -> vector<4x8x1xf32>
    %56 = vector.broadcast %55 : vector<4x8x1xf32> to vector<4x8x8xf32>
    %57 = arith.mulf %52, %56 : vector<4x8x8xf32>
    "tpu.trace_start"() <{level = 10 : i32, message = "hqk,hkd->hqd"}> : () -> ()
    %cst_22 = arith.constant dense<0.000000e+00> : vector<4x8x8xf32>
    %58 = tpu.matmul %57, %46, %cst_22 {dimension_numbers = #tpu.dot_dimension_numbers<[2], [1], [1], [2], [0, 0, 0, 1, 1, 2], [0], [0]>} : vector<4x8x8xf32>, vector<4x8x8xf32>, vector<4x8x8xf32> -> vector<4x8x8xf32>
    "tpu.trace_stop"() : () -> ()
    %59 = tpu.transpose %58, [1, 0, 2] : vector<4x8x8xf32> -> vector<8x4x8xf32>
    %60 = vector.shape_cast %59 : vector<8x4x8xf32> to vector<8x32xf32>
    %61 = arith.truncf %60 : vector<8x32xf32> to vector<8x32xbf16>
    %c0_23 = arith.constant 0 : index
    %c0_24 = arith.constant 0 : index
    %c0_25 = arith.constant 0 : index
    %62 = vector.load %arg8[%c0_23, %c0_24, %c0_25] : memref<1x32x32xbf16, #tpu.memory_space<vmem>>, vector<1x32x32xbf16>
    %63 = vector.shape_cast %62 : vector<1x32x32xbf16> to vector<32x32xbf16>
    %cst_26 = arith.constant dense<0.000000e+00> : vector<8x32xf32>
    %64 = tpu.matmul %61, %63, %cst_26 {dimension_numbers = #tpu.dot_dimension_numbers<[1], [0], [0], [1], [0, 0, 1, 1], [], []>} : vector<8x32xbf16>, vector<32x32xbf16>, vector<8x32xf32> -> vector<8x32xf32>
    %c0_27 = arith.constant 0 : index
    %c0_28 = arith.constant 0 : index
    %c0_29 = arith.constant 0 : index
    %65 = vector.load %arg9[%c0_27, %c0_28, %c0_29] : memref<1x1x32xf32, #tpu.memory_space<vmem>>, vector<1x1x32xf32>
    %66 = vector.shape_cast %65 : vector<1x1x32xf32> to vector<1x32xf32>
    %67 = vector.broadcast %66 : vector<1x32xf32> to vector<8x32xf32>
    %68 = arith.addf %64, %67 : vector<8x32xf32>
    %69 = arith.addf %3, %68 : vector<8x32xf32>
    %c0_30 = arith.constant 0 : index
    %c0_31 = arith.constant 0 : index
    %c0_32 = arith.constant 0 : index
    %70 = vector.load %arg12[%c0_30, %c0_31, %c0_32] : memref<1x1x32xf32, #tpu.memory_space<vmem>>, vector<1x1x32xf32>
    %71 = vector.shape_cast %70 : vector<1x1x32xf32> to vector<1x32xf32>
    %c0_33 = arith.constant 0 : index
    %c0_34 = arith.constant 0 : index
    %c0_35 = arith.constant 0 : index
    %72 = vector.load %arg13[%c0_33, %c0_34, %c0_35] : memref<1x1x32xf32, #tpu.memory_space<vmem>>, vector<1x1x32xf32>
    %73 = vector.shape_cast %72 : vector<1x1x32xf32> to vector<1x32xf32>
    %cst_36 = arith.constant dense<0.000000e+00> : vector<8xf32>
    %74 = vector.multi_reduction <add>, %69, %cst_36 [1] : vector<8x32xf32> to vector<8xf32>
    %75 = vector.shape_cast %74 : vector<8xf32> to vector<8x1xf32>
    %cst_37 = arith.constant 3.200000e+01 : f32
    %76 = vector.broadcast %cst_37 : f32 to vector<8x1xf32>
    %77 = arith.divf %75, %76 : vector<8x1xf32>
    %78 = vector.broadcast %77 : vector<8x1xf32> to vector<8x32xf32>
    %79 = arith.subf %69, %78 : vector<8x32xf32>
    %80 = arith.mulf %79, %79 : vector<8x32xf32>
    %cst_38 = arith.constant dense<0.000000e+00> : vector<8xf32>
    %81 = vector.multi_reduction <add>, %80, %cst_38 [1] : vector<8x32xf32> to vector<8xf32>
    %82 = vector.shape_cast %81 : vector<8xf32> to vector<8x1xf32>
    %cst_39 = arith.constant 3.200000e+01 : f32
    %83 = vector.broadcast %cst_39 : f32 to vector<8x1xf32>
    %84 = arith.divf %82, %83 : vector<8x1xf32>
    %85 = vector.broadcast %77 : vector<8x1xf32> to vector<8x32xf32>
    %86 = arith.subf %69, %85 : vector<8x32xf32>
    %cst_40 = arith.constant 9.99999974E-6 : f32
    %87 = vector.broadcast %cst_40 : f32 to vector<8x1xf32>
    %88 = arith.addf %84, %87 : vector<8x1xf32>
    %89 = math.rsqrt %88 : vector<8x1xf32>
    %90 = vector.broadcast %89 : vector<8x1xf32> to vector<8x32xf32>
    %91 = arith.mulf %86, %90 : vector<8x32xf32>
    %92 = vector.broadcast %71 : vector<1x32xf32> to vector<8x32xf32>
    %93 = arith.mulf %91, %92 : vector<8x32xf32>
    %94 = vector.broadcast %73 : vector<1x32xf32> to vector<8x32xf32>
    %95 = arith.addf %93, %94 : vector<8x32xf32>
    %96 = arith.truncf %95 : vector<8x32xf32> to vector<8x32xbf16>
    %c0_41 = arith.constant 0 : index
    %c0_42 = arith.constant 0 : index
    %c0_43 = arith.constant 0 : index
    %97 = vector.load %arg14[%c0_41, %c0_42, %c0_43] : memref<1x32x64xbf16, #tpu.memory_space<vmem>>, vector<1x32x64xbf16>
    %98 = vector.shape_cast %97 : vector<1x32x64xbf16> to vector<32x64xbf16>
    %cst_44 = arith.constant dense<0.000000e+00> : vector<8x64xf32>
    %99 = tpu.matmul %96, %98, %cst_44 {dimension_numbers = #tpu.dot_dimension_numbers<[1], [0], [0], [1], [0, 0, 1, 1], [], []>} : vector<8x32xbf16>, vector<32x64xbf16>, vector<8x64xf32> -> vector<8x64xf32>
    %c0_45 = arith.constant 0 : index
    %c0_46 = arith.constant 0 : index
    %c0_47 = arith.constant 0 : index
    %100 = vector.load %arg15[%c0_45, %c0_46, %c0_47] : memref<1x1x64xf32, #tpu.memory_space<vmem>>, vector<1x1x64xf32>
    %101 = vector.shape_cast %100 : vector<1x1x64xf32> to vector<1x64xf32>
    %102 = vector.broadcast %101 : vector<1x64xf32> to vector<8x64xf32>
    %103 = arith.addf %99, %102 : vector<8x64xf32>
    %cst_48 = arith.constant 0.000000e+00 : f32
    %104 = vector.broadcast %cst_48 : f32 to vector<8x64xf32>
    %105 = arith.maximumf %103, %104 : vector<8x64xf32>
    %106 = arith.truncf %105 : vector<8x64xf32> to vector<8x64xbf16>
    %c0_49 = arith.constant 0 : index
    %c0_50 = arith.constant 0 : index
    %c0_51 = arith.constant 0 : index
    %107 = vector.load %arg16[%c0_49, %c0_50, %c0_51] : memref<1x64x32xbf16, #tpu.memory_space<vmem>>, vector<1x64x32xbf16>
    %108 = vector.shape_cast %107 : vector<1x64x32xbf16> to vector<64x32xbf16>
    %cst_52 = arith.constant dense<0.000000e+00> : vector<8x32xf32>
    %109 = tpu.matmul %106, %108, %cst_52 {dimension_numbers = #tpu.dot_dimension_numbers<[1], [0], [0], [1], [0, 0, 1, 1], [], []>} : vector<8x64xbf16>, vector<64x32xbf16>, vector<8x32xf32> -> vector<8x32xf32>
    %c0_53 = arith.constant 0 : index
    %c0_54 = arith.constant 0 : index
    %c0_55 = arith.constant 0 : index
    %110 = vector.load %arg17[%c0_53, %c0_54, %c0_55] : memref<1x1x32xf32, #tpu.memory_space<vmem>>, vector<1x1x32xf32>
    %111 = vector.shape_cast %110 : vector<1x1x32xf32> to vector<1x32xf32>
    %112 = vector.broadcast %111 : vector<1x32xf32> to vector<8x32xf32>
    %113 = arith.addf %109, %112 : vector<8x32xf32>
    %114 = arith.addf %69, %113 : vector<8x32xf32>
    %c0_56 = arith.constant 0 : index
    %c0_57 = arith.constant 0 : index
    %115 = vector.load %arg21[%c0_56, %c0_57] : memref<8x32xf32, #tpu.memory_space<vmem>>, vector<8x32xf32>
    tpu.vector_store %arg21[%c0_56, %c0_57], %114 {strides = array<i32>} : memref<8x32xf32, #tpu.memory_space<vmem>>, vector<8x32xf32>,
    %c1_i32 = arith.constant 1 : i32
    %116 = arith.cmpi eq, %arg1, %c1_i32 : i32
    %117 = arith.extui %116 : i1 to i32
    %c0_i32_58 = arith.constant 0 : i32
    %118 = arith.cmpi ne, %117, %c0_i32_58 : i32
    scf.if %118 {
      %cst_59 = arith.constant dense<0.000000e+00> : vector<32xf32>
      %119 = vector.multi_reduction <add>, %114, %cst_59 [0] : vector<8x32xf32> to vector<32xf32>
      %120 = vector.shape_cast %119 : vector<32xf32> to vector<1x32xf32>
      %cst_60 = arith.constant 8.000000e+00 : f32
      %121 = vector.broadcast %cst_60 : f32 to vector<1x32xf32>
      %122 = arith.divf %120, %121 : vector<1x32xf32>
      %c0_61 = arith.constant 0 : index
      %c0_62 = arith.constant 0 : index
      %123 = vector.load %arg18[%c0_61, %c0_62] : memref<32x10xf32, #tpu.memory_space<vmem>>, vector<32x10xf32>
      %cst_63 = arith.constant dense<0.000000e+00> : vector<1x10xf32>
      %124 = tpu.matmul %122, %123, %cst_63 {dimension_numbers = #tpu.dot_dimension_numbers<[1], [0], [0], [1], [0, 0, 1, 1], [], []>} : vector<1x32xf32>, vector<32x10xf32>, vector<1x10xf32> -> vector<1x10xf32>
      %c0_64 = arith.constant 0 : index
      %c0_65 = arith.constant 0 : index
      %125 = vector.load %arg19[%c0_64, %c0_65] : memref<1x10xf32, #tpu.memory_space<vmem>>, vector<1x10xf32>
      %126 = arith.addf %124, %125 : vector<1x10xf32>
      %c0_66 = arith.constant 0 : index
      %c0_67 = arith.constant 0 : index
      %c0_68 = arith.constant 0 : index
      %127 = vector.load %arg20[%c0_66, %c0_67, %c0_68] : memref<1x1x10xf32, #tpu.memory_space<vmem>>, vector<1x1x10xf32>
      %128 = vector.shape_cast %127 : vector<1x1x10xf32> to vector<1x10xf32>
      %129 = vector.shape_cast %126 : vector<1x10xf32> to vector<1x1x10xf32>
      tpu.vector_store %arg20[%c0_66, %c0_67, %c0_68], %129 {strides = array<i32>} : memref<1x1x10xf32, #tpu.memory_space<vmem>>, vector<1x1x10xf32>,
    } else {
    }
    return
  }
  func.func @transform_0(%arg0: i32, %arg1: i32) -> (i32, i32, i32) {
    %c0_i32 = arith.constant 0 : i32
    %c0_i32_0 = arith.constant 0 : i32
    %c0_i32_1 = arith.constant 0 : i32
    return %arg0, %c0_i32, %c0_i32_0 : i32, i32, i32
  }
  func.func @transform_1(%arg0: i32, %arg1: i32) -> (i32, i32) {
    %c0_i32 = arith.constant 0 : i32
    %c0_i32_0 = arith.constant 0 : i32
    %c0_i32_1 = arith.constant 0 : i32
    return %c0_i32, %c0_i32_0 : i32, i32
  }
  func.func @transform_2(%arg0: i32, %arg1: i32) -> (i32, i32) {
    %c0_i32 = arith.constant 0 : i32
    %c0_i32_0 = arith.constant 0 : i32
    %c0_i32_1 = arith.constant 0 : i32
    return %c0_i32, %c0_i32_0 : i32, i32
  }
  func.func @transform_3(%arg0: i32, %arg1: i32) -> (i32, i32) {
    %c0_i32 = arith.constant 0 : i32
    %c0_i32_0 = arith.constant 0 : i32
    %c0_i32_1 = arith.constant 0 : i32
    return %c0_i32, %c0_i32_0 : i32, i32
  }
  func.func @transform_4(%arg0: i32, %arg1: i32) -> (i32, i32, i32) {
    %c0_i32 = arith.constant 0 : i32
    %c0_i32_0 = arith.constant 0 : i32
    %c0_i32_1 = arith.constant 0 : i32
    return %arg1, %c0_i32, %c0_i32_0 : i32, i32, i32
  }
  func.func @transform_5(%arg0: i32, %arg1: i32) -> (i32, i32, i32) {
    %c0_i32 = arith.constant 0 : i32
    %c0_i32_0 = arith.constant 0 : i32
    %c0_i32_1 = arith.constant 0 : i32
    return %arg1, %c0_i32, %c0_i32_0 : i32, i32, i32
  }
  func.func @transform_6(%arg0: i32, %arg1: i32) -> (i32, i32, i32) {
    %c0_i32 = arith.constant 0 : i32
    %c0_i32_0 = arith.constant 0 : i32
    %c0_i32_1 = arith.constant 0 : i32
    return %arg1, %c0_i32, %c0_i32_0 : i32, i32, i32
  }
  func.func @transform_7(%arg0: i32, %arg1: i32) -> (i32, i32, i32) {
    %c0_i32 = arith.constant 0 : i32
    %c0_i32_0 = arith.constant 0 : i32
    %c0_i32_1 = arith.constant 0 : i32
    return %arg1, %c0_i32, %c0_i32_0 : i32, i32, i32
  }
  func.func @transform_8(%arg0: i32, %arg1: i32) -> (i32, i32, i32) {
    %c0_i32 = arith.constant 0 : i32
    %c0_i32_0 = arith.constant 0 : i32
    %c0_i32_1 = arith.constant 0 : i32
    return %arg1, %c0_i32, %c0_i32_0 : i32, i32, i32
  }
  func.func @transform_9(%arg0: i32, %arg1: i32) -> (i32, i32, i32) {
    %c0_i32 = arith.constant 0 : i32
    %c0_i32_0 = arith.constant 0 : i32
    %c0_i32_1 = arith.constant 0 : i32
    return %arg1, %c0_i32, %c0_i32_0 : i32, i32, i32
  }
  func.func @transform_10(%arg0: i32, %arg1: i32) -> (i32, i32, i32) {
    %c0_i32 = arith.constant 0 : i32
    %c0_i32_0 = arith.constant 0 : i32
    %c0_i32_1 = arith.constant 0 : i32
    return %arg1, %c0_i32, %c0_i32_0 : i32, i32, i32
  }
  func.func @transform_11(%arg0: i32, %arg1: i32) -> (i32, i32, i32) {
    %c0_i32 = arith.constant 0 : i32
    %c0_i32_0 = arith.constant 0 : i32
    %c0_i32_1 = arith.constant 0 : i32
    return %arg1, %c0_i32, %c0_i32_0 : i32, i32, i32
  }
  func.func @transform_12(%arg0: i32, %arg1: i32) -> (i32, i32, i32) {
    %c0_i32 = arith.constant 0 : i32
    %c0_i32_0 = arith.constant 0 : i32
    %c0_i32_1 = arith.constant 0 : i32
    return %arg1, %c0_i32, %c0_i32_0 : i32, i32, i32
  }
  func.func @transform_13(%arg0: i32, %arg1: i32) -> (i32, i32, i32) {
    %c0_i32 = arith.constant 0 : i32
    %c0_i32_0 = arith.constant 0 : i32
    %c0_i32_1 = arith.constant 0 : i32
    return %arg1, %c0_i32, %c0_i32_0 : i32, i32, i32
  }
  func.func @transform_14(%arg0: i32, %arg1: i32) -> (i32, i32, i32) {
    %c0_i32 = arith.constant 0 : i32
    %c0_i32_0 = arith.constant 0 : i32
    %c0_i32_1 = arith.constant 0 : i32
    return %arg1, %c0_i32, %c0_i32_0 : i32, i32, i32
  }
  func.func @transform_15(%arg0: i32, %arg1: i32) -> (i32, i32, i32) {
    %c0_i32 = arith.constant 0 : i32
    %c0_i32_0 = arith.constant 0 : i32
    %c0_i32_1 = arith.constant 0 : i32
    return %arg1, %c0_i32, %c0_i32_0 : i32, i32, i32
  }
  func.func @transform_16(%arg0: i32, %arg1: i32) -> (i32, i32) {
    %c0_i32 = arith.constant 0 : i32
    %c0_i32_0 = arith.constant 0 : i32
    %c0_i32_1 = arith.constant 0 : i32
    return %c0_i32, %c0_i32_0 : i32, i32
  }
  func.func @transform_17(%arg0: i32, %arg1: i32) -> (i32, i32) {
    %c0_i32 = arith.constant 0 : i32
    %c0_i32_0 = arith.constant 0 : i32
    %c0_i32_1 = arith.constant 0 : i32
    return %c0_i32, %c0_i32_0 : i32, i32
  }
  func.func @transform_18(%arg0: i32, %arg1: i32) -> (i32, i32, i32) {
    %c0_i32 = arith.constant 0 : i32
    %c0_i32_0 = arith.constant 0 : i32
    %c0_i32_1 = arith.constant 0 : i32
    return %arg0, %c0_i32, %c0_i32_0 : i32, i32, i32
  }
}

</mosaic_0001>

<bundles_post_ra>
// kernel: tpu_custom_call.1
= control target key start
LH: loop header
LB: loop body
LE: loop exit
PB: predicated region body
PF: predicated region fallthrough
CT: control target
= control target key end

     0   :  { %s3611_s0 = inlined_call_operand.vmem [shape: f32[2,8,8], index: 0, kind: input, shape index: {}]   ;;  %s3612_s1 = inlined_call_operand.vmem [shape: f32[8,32], index: 1, kind: input, shape index: {}]   ;;  %s3613_s2 = inlined_call_operand.vmem [shape: f32[1,32], index: 2, kind: input, shape index: {}]   ;;  %s3614_s3 = inlined_call_operand.hbm [shape: f32[8,32], index: 3, kind: input, shape index: {}]   ;;  %s3615_s4 = inlined_call_operand.vmem [shape: bf16[2,32,96], index: 4, kind: input, shape index: {}]   ;;  %s3616_s5 = inlined_call_operand.vmem [shape: f32[2,1,96], index: 5, kind: input, shape index: {}]   ;;  %s3617_s6 = inlined_call_operand.vmem [shape: bf16[2,32,32], index: 6, kind: input, shape index: {}]   ;;  %s3618_s7 = inlined_call_operand.vmem [shape: f32[2,1,32], index: 7, kind: input, shape index: {}]   ;;  %s3619_s8 = inlined_call_operand.hbm [shape: f32[2,1,32], index: 8, kind: input, shape index: {}]   ;;  %s3620_s9 = inlined_call_operand.hbm [shape: f32[2,1,32], index: 9, kind: input, shape index: {}]   ;;  %s3621_s10 = inlined_call_operand.hbm [shape: f32[2,1,32], index: 10, kind: input, shape index: {}]   ;;  %s3622_s11 = inlined_call_operand.hbm [shape: f32[2,1,32], index: 11, kind: input, shape index: {}]   ;;  %s3623_s12 = inlined_call_operand.vmem [shape: bf16[2,32,64], index: 12, kind: input, shape index: {}]   ;;  %s3624_s13 = inlined_call_operand.hbm [shape: f32[2,1,64], index: 13, kind: input, shape index: {}]   ;;  %s3625_s14 = inlined_call_operand.vmem [shape: bf16[2,64,32], index: 14, kind: input, shape index: {}]   ;;  %s3626_s15 = inlined_call_operand.hbm [shape: f32[2,1,32], index: 15, kind: input, shape index: {}]   ;;  %s3627_s16 = inlined_call_operand.vmem [shape: f32[32,10], index: 16, kind: input, shape index: {}]   ;;  %s3628_s17 = inlined_call_operand.vmem [shape: f32[1,10], index: 17, kind: input, shape index: {}]   ;;  %s3629_s18 = inlined_call_operand.hbm [shape: f32[2,1,10], index: 18, kind: output, shape index: {}]  }
   0x1   :  { %3643 = sst [smem:[#allocation31_spill]] %s3611_s0 }
   0x2   :  { %3644 = sst [smem:[#allocation32_spill]] %s3612_s1 }
   0x3   :  { %3645 = sst [smem:[#allocation33_spill]] %s3613_s2 }
   0x4   :  { %3646 = sst [smem:[#allocation34_spill]] %s3614_s3 }
   0x5   :  { %3647 = sst [smem:[#allocation35_spill]] %s3615_s4 }
   0x6   :  { %3648 = sst [smem:[#allocation36_spill]] %s3616_s5 }
   0x7   :  { %3649 = sst [smem:[#allocation37_spill]] %s3617_s6 }
   0x8   :  { %3650 = sst [smem:[#allocation38_spill]] %s3618_s7 }
   0x9   :  { %3651 = sst [smem:[#allocation39_spill]] %s3619_s8 }
   0xa   :  { %3652 = sst [smem:[#allocation40_spill]] %s3620_s9 }
   0xb   :  { %3653 = sst [smem:[#allocation41_spill]] %s3621_s10 }
   0xc   :  { %3654 = sst [smem:[#allocation42_spill]] %s3622_s11 }
   0xd   :  { %3655 = sst [smem:[#allocation43_spill]] %s3623_s12 }
   0xe   :  { %3656 = sst [smem:[#allocation44_spill]] %s3624_s13 }
   0xf   :  { %3657 = sst [smem:[#allocation45_spill]] %s3625_s14 }
  0x10   :  { %3658 = sst [smem:[#allocation46_spill]] %s3626_s15 }
  0x11   :  { %3659 = sst [smem:[#allocation47_spill]] %s3627_s16 }
  0x12   :  { %3660 = sst [smem:[#allocation48_spill]] %s3628_s17 }
  0x13   :  { %3661 = sst [smem:[#allocation49_spill]] %s3629_s18 }
  0x14   :  { %23 = vsyncpa [#allocation4], 0 }
  0x15   :  { %24 = vsyncpa [#allocation7], 0 }
  0x16   :  { %26 = vsyncpa [#allocation7 + $0x1], 0 }
  0x17   :  { %27 = vsyncpa [#allocation10], 0 }
  0x18   :  { %29 = vsyncpa [#allocation10 + $0x1], 0 }
  0x19   :  { %30 = vsyncpa [#allocation13], 0 }
  0x1a   :  { %32 = vsyncpa [#allocation13 + $0x1], 0 }
  0x1b   :  { %33 = vsyncpa [#allocation5], 0 }
  0x1c   :  { %35 = vsyncpa [#allocation5 + $0x1], 0  ;;  %s2970_s27 = smov 0   ;;  %s2972_s28 = smov 0  }
  0x1d   :  { %s2974_s29 = smov 0   ;;  %s2976_s30 = smov 0  }
  0x1e   :  { %s2978_s0 = smov 0   ;;  %s2980_s19 = smov 0  }
  0x1f   :  { %s2982_s1 = smov 0   ;;  %s2984_s20 = smov 0  }
  0x20   :  { %s2986_s21 = smov 0   ;;  %s2988_s22 = smov 0  }
  0x21   :  { %s2990_s2 = smov 0  }
  0x22 LB: > { %3662 = sst [smem:[#allocation21_spill]] %s2820_s27  ;;  %s50_s23 = sadd.s32 1, %s2852_s21  ;;  %s2860_s2 = sphi %s2990_s2, %s41_s2   ;;  %s2856_s22 = sphi %s2988_s22, %s3719_s22   ;;  %s2852_s21 = sphi %s2986_s21, %s3718_s21   ;;  %s2848_s20 = sphi %s2984_s20, %s3717_s20   ;;  %s2844_s1 = sphi %s2982_s1, %s3724_s1   ;;  %s2840_s19 = sphi %s2980_s19, %s3715_s19   ;;  %s2836_s0 = sphi %s2978_s0, %s3723_s0   ;;  %s2832_s30 = sphi %s2976_s30, %s3722_s30   ;;  %s2828_s29 = sphi %s2974_s29, %s3713_s29   ;;  %s2824_s28 = sphi %s2972_s28, %s3721_s28   ;;  %s2820_s27 = sphi %s2970_s27, %s3720_s27  }
  0x23   : > { %3663 = sst [smem:[#allocation22_spill]] %s2828_s29  ;;  %s253_s24 = sadd.s32 1, %s2840_s19 }
  0x24   : > { %3664 = sst [smem:[#allocation23_spill]] %s2840_s19  ;;  %p3027_p0 = scmp.ge.s32.totalorder %s50_s23, 2 }
  0x25   : > { %3665 = sst [smem:[#allocation24_spill]] %s2852_s21  ;;  %p260_p1 = scmp.ne.s32.totalorder %s2840_s19, %s2836_s0 }
  0x26   : > { %3666 = sst [smem:[#allocation25_spill]] %s2856_s22  ;;  %p261_p2 = scmp.eq.s32.totalorder %s2860_s2, 0 }
  0x27   : > { %s3726_s23 = smov (%p3027_p0, %s50_s23), 0  ;;  %p2369_p4 = scmp.lt.s32.totalorder %s2860_s2, 4 }
  0x28   : > { %3668 = sst [smem:[#allocation26_spill]] %s3726_s23  ;;  %p3038_p3 = por %p261_p2, %p260_p1 }
  0x29   : > { %s250_s18 = ssub.s32 %s2852_s21, %s3726_s23  ;;  %s3046_s17 = sand.u32 1, %s2860_s2  }
  0x2a   : > { %p251_p5 = scmp.eq.s32.totalorder %s250_s18, 0  ;;  %s3049_s16 = sand.u32 1, %s2840_s19  }
  0x2b   : > { %s3670_s8 = sld [smem:[#allocation39_spill]]  ;;  %s602_s23 = scalar_lea.vmem [#allocation6], %s3049_s16 }
  0x2c   : > { %s3056_s6 = scalar_select %p251_p5, %s2840_s19, %s253_s24  }
  0x2d   : > { %s609_s4 = sshll.u32 %s602_s23, 4  ;;  %p3061_p6 = pnand %p2369_p4, %p3038_p3  ;;  %s610_s4 = int_to_ptr.vmem [resolvable:$true] %s609_s4 }
  0x2e   : > { %3671 = sst [smem:[#allocation27_spill]] %s3056_s6  ;;  %s636_s23 = scalar_lea.vmem [#allocation9], %s3049_s16 }
  0x2f   : > { %s3673_s10 = sld [smem:[#allocation41_spill]]  ;;  %s643_s26 = sshll.u32 %s636_s23, 4  ;;  %s644_s26 = int_to_ptr.vmem [resolvable:$true] %s643_s26 }
  0x30   : > { %s3635_s12 = scalar_lea.sflag [#allocation10], %s3046_s17  ;;  %s3674_s13 = sld [smem:[#allocation44_spill]] }
  0x31   : > { %s605_s7 = scalar_lea.hbm %s3670_s8, %s2852_s21  ;;  %s3633_s8 = scalar_lea.sflag [#allocation7], %s3046_s17 }
  0x32   : > { %s607_s5 = sshll.u32 %s605_s7, 4  ;;  %p266_p7 = scmp.ne.s32.totalorder %s2836_s0, %s2832_s30  ;;  %s608_s5 = int_to_ptr.hbm [resolvable:$true] %s607_s5 }
  0x33   : > { %2348 = dma.hbm_to_vmem [thread:$0]  (!%p3061_p6), %s608_s5, 16, %s610_s4, %s3633_s8  }
  0x34   : > { %s678_s5 = scalar_lea.vmem [#allocation12], %s3049_s16  ;;  %s3634_s8 = scalar_lea.sflag [#allocation13], %s3046_s17 }
  0x35   : > { %s639_s24 = scalar_lea.hbm %s3673_s10, %s2852_s21  ;;  %s2232_s10 = sadd.s32 4294967294, %s2860_s2  }
  0x36   : > { %s641_s7 = sshll.u32 %s639_s24, 4  ;;  %s681_s4 = scalar_lea.hbm %s3674_s13, %s2852_s21  ;;  %s642_s7 = int_to_ptr.hbm [resolvable:$true] %s641_s7 }
  0x37   : > { %2354 = dma.hbm_to_vmem [thread:$0]  (!%p3061_p6), %s642_s7, 16, %s644_s26, %s3635_s12  }
  0x38   : > { %s685_s24 = sshll.u32 %s678_s5, 4  ;;  %s683_s23 = sshll.u32 %s681_s4, 4  ;;  %s686_s24 = int_to_ptr.vmem [resolvable:$true] %s685_s24  ;;  %s684_s23 = int_to_ptr.hbm [resolvable:$true] %s683_s23 }
  0x39   : > { %2360 = dma.hbm_to_vmem [thread:$0]  (!%p3061_p6), %s684_s23, 16, %s686_s24, %s3634_s8  }
  0x3a   : > { %s3091_s7 = sadd.s32 4294967295, %s2860_s2   ;;  %s53_s26 = sadd.s32 1, %s2856_s22 }
  0x3b   : > { %s3728_s26 = smov (!%p3027_p0, %s53_s26), %s2856_s22  ;;  %p267_p8 = scmp.eq.s32.totalorder %s3091_s7, 0 }
  0x3c   : > { %p55_p9 = scmp.ge.s32.totalorder %s3728_s26, 2  ;;  %s503_s14 = sadd.s32 1, %s2828_s29 }
  0x3d   : > { %p3104_p10 = por %p267_p8, %p266_p7  ;;  %p513_p11 = scmp.ne.s32.totalorder %s2828_s29, %s2824_s28 }
  0x3e   : > { %s3730_s26 = smov (%p55_p9, %s3728_s26), 0  ;;  %p514_p12 = scmp.eq.s32.totalorder %s3091_s7, 3 }
  0x3f   : > { %3676 = sst [smem:[#allocation28_spill]] %s3730_s26  ;;  %p519_p13 = scmp.ne.s32.totalorder %s2824_s28, %s2820_s27 }
  0x40   : > { %s500_s25 = ssub.s32 %s2856_s22, %s3730_s26  ;;  %p520_p0 = scmp.eq.s32.totalorder %s2232_s10, 3 }
  0x41   : > { %p501_p1 = scmp.eq.s32.totalorder %s500_s25, 0  ;;  %p3117_p2 = por %p514_p12, %p513_p11 }
  0x42   : > { %p3121_p3 = por %p520_p0, %p519_p13  ;;  %p2233_p4 = scmp.ge.s32.totalorder %s2860_s2, 1 }
  0x43   : > { %s3127_s24 = scalar_select %p501_p1, %s2828_s29, %s503_s14  }
  0x44   : > { %s3678_s5 = scalar_select %p3121_p3, 1, 0 }
  0x45   : > { %3680 = sst [smem:[#allocation30_spill]] %s3127_s24  ;;  %p527_p5 = scmp.lt.s32.totalorder %s2860_s2, 5 }
  0x46   : > { %3679 = sst [smem:[#allocation29_spill]] %s3678_s5  ;;  %s2862_s12 = smov [#allocation3]  }
  0x47   : > { %s3681_s3 = sld [smem:[#allocation34_spill]]  ;;  %p3133_p7 = pnand %p2233_p4, %p527_p5 }
  0x48   : > { %s547_s13 = sshll.u32 %s2862_s12, 4  ;;  %s3683_s9 = sld [smem:[#allocation40_spill]]  ;;  %s548_s13 = int_to_ptr.vmem [resolvable:$true] %s547_s13 }
  0x49   : > { %p2341_p9 = pneg %p3133_p7  ;;  %s619_s23 = scalar_lea.vmem [#allocation8], %s3049_s16 }
  0x4a   : > { %s3684_s12 = scalar_lea.sflag [#allocation7], %s3046_s17  ;;  %s3685_s11 = sld [smem:[#allocation42_spill]] }
  0x4b   : > { %p2342_p11 = pnand %p2341_p9, %p267_p8  ;;  %s3687_s15 = sld [smem:[#allocation46_spill]] }
  0x4d   : > { %s545_s10 = sshll.u32 %s3681_s3, 4  ;;  %s626_s3 = sshll.u32 %s619_s23, 4  ;;  %s546_s10 = int_to_ptr.hbm [resolvable:$true] %s545_s10  ;;  %s627_s3 = int_to_ptr.vmem [resolvable:$true] %s626_s3 }
  0x4e   : > { %s622_s8 = scalar_lea.hbm %s3683_s9, %s2852_s21  ;;  %s653_s9 = scalar_lea.vmem [#allocation11], %s3049_s16 }
  0x4f   : > { %s624_s22 = sshll.u32 %s622_s8, 4  ;;  %s660_s19 = sshll.u32 %s653_s9, 4  ;;  %s625_s22 = int_to_ptr.hbm [resolvable:$true] %s624_s22  ;;  %s661_s19 = int_to_ptr.vmem [resolvable:$true] %s660_s19 }
  0x50   : > { %2344 = dma.hbm_to_vmem [thread:$0]  (!%p2342_p11), %s546_s10, 128, %s548_s13, [#allocation4]  }
  0x51   : > { %2351 = dma.hbm_to_vmem [thread:$0]  (!%p3061_p6), %s625_s22, 16, %s627_s3, %s3684_s12  }
  0x52   : > { %s656_s14 = scalar_lea.hbm %s3685_s11, %s2852_s21  ;;  %s3686_s23 = scalar_lea.sflag [#allocation10], %s3046_s17 }
  0x53   : > { %s658_s24 = sshll.u32 %s656_s14, 4  ;;  %s706_s5 = scalar_lea.hbm %s3687_s15, %s2852_s21  ;;  %s659_s24 = int_to_ptr.hbm [resolvable:$true] %s658_s24 }
  0x54   : > { %2357 = dma.hbm_to_vmem [thread:$0]  (!%p3061_p6), %s659_s24, 16, %s661_s19, %s3686_s23  }
  0x55   : > { %s703_s13 = scalar_lea.vmem [#allocation14], %s3049_s16  ;;  %s708_s27 = sshll.u32 %s706_s5, 4  ;;  %s709_s27 = int_to_ptr.hbm [resolvable:$true] %s708_s27 }
  0x56   : > { %s710_s10 = sshll.u32 %s703_s13, 4  ;;  %s3688_s3 = scalar_lea.sflag [#allocation13], %s3046_s17  ;;  %s711_s10 = int_to_ptr.vmem [resolvable:$true] %s710_s10 }
  0x57   : > { %2363 = dma.hbm_to_vmem [thread:$0]  (!%p3061_p6), %s709_s27, 16, %s711_s10, %s3688_s3  }
  0x58   : > { %719 = sbr.rel (%p3133_p7) target bundleno = 2431 (0x97f), region = 92 }
  0x5d   : > { %2799 = dma.done.wait (%p267_p8), [#allocation4], 128  }
  0x5e   : > { %2801 = vsyncadd (%p267_p8), [#allocation4], 4294967168  ;;  %s726_s6 = sand.u32 1, %s3091_s7   ;;  %s3176_s9 = sand.u32 1, %s2836_s0  }
  0x5f   : > { %s727_s16 = scalar_lea.sflag [#allocation7], %s726_s6 }
  0x60   : > { %2803 = dma.done.wait (%p3104_p10), %s727_s16, 32  }
  0x61   : > { %2805 = vsyncadd (%p3104_p10), %s727_s16, 4294967264  ;;  %s745_s27 = scalar_lea.sflag [#allocation10], %s726_s6 }
  0x62   : > { %2807 = dma.done.wait (%p3104_p10), %s745_s27, 32  }
  0x63   : > { %2809 = vsyncadd (%p3104_p10), %s745_s27, 4294967264  ;;  %s763_s18 = scalar_lea.sflag [#allocation13], %s726_s6 }
  0x64   : > { %2811 = dma.done.wait (%p3104_p10), %s763_s18, 32  }
  0x65   : > { %2813 = vsyncadd (%p3104_p10), %s763_s18, 4294967264  ;;  %p876_p6 = scmp.lt.s32.totalorder %s2848_s20, 1  ;;  %p880_p8 = scmp.lt.s32.totalorder %s2844_s1, 1 }
  0x66   : > { %s3689_s14 = sld [smem:[#allocation31_spill]]  ;;  %s774_s27 = scalar_lea.vmem [#allocation14], %s3176_s9 }
  0x67   : > { %s877_s24 = scalar_select %p876_p6, %s2848_s20, 1 }
  0x68   : > { %s3200_s25 = scalar_select %p880_p8, %s2844_s1, 1 }
  0x69   : > { %s2238_s12 = sshll.u32 %s877_s24, 3  ;;  %s3690_s3 = sld [smem:[#allocation35_spill]] }
  0x6a   : > { %s2309_s8 = sshll.u32 %s3200_s25, 4  ;;  %s3691_s18 = sld [smem:[#allocation36_spill]] }
  0x6b   : > { %s3692_s17 = sld [smem:[#allocation37_spill]]  ;;  %s2312_s13 = sshll.u32 %s3200_s25, 5 }
  0x6c   : > { %s879_s23 = scalar_lea.vmem %s3689_s14, %s2238_s12  ;;  %s3693_s11 = sld [smem:[#allocation38_spill]] }
  0x6d   : > { %s3694_s14 = sld [smem:[#allocation43_spill]]  ;;  %p2247_p10 = scmp.ne.s32.totalorder %s2844_s1, 0 }
  0x6e   : > { %s3695_s21 = sld [smem:[#allocation45_spill]] }
  0x6f   : > { %s3209_s6 = scalar_lea.vmem %s3690_s3, %s2309_s8  ;;  %s3697_s22 = sld [smem:[#allocation32_spill]] (!%p2247_p10) }
  0x70   : > { %s887_s7 = scalar_lea.vmem %s3691_s18, %s3200_s25  ;;  %s3696_s18 = sand.u32 1, %s2824_s28  }
  0x71   : > { %s3218_s29 = scalar_lea.vmem %s3692_s17, %s2309_s8  ;;  %s3238_s19 = scalar_lea.vmem [#allocation15], %s3696_s18 }
  0x72   : > { %s895_s4 = scalar_lea.vmem %s3693_s11, %s3200_s25  ;;  %910 = sbr.rel (%p2247_p10) target bundleno = 252 (0xfc), region = 124 }
  0x73   : > { %s3227_s15 = scalar_lea.vmem %s3694_s14, %s2309_s8  ;;  %s3698_s24 = sld [smem:[#allocation33_spill]] (!%p2247_p10) }
  0x74   : > { %s3233_s16 = scalar_lea.vmem %s3695_s21, %s2312_s13 }
  0x77   : > { %v912_v0 = vld [vmem:[%s3697_s22] sm:$0xff]  ;;  %vm917_vm0 = vcmask 64512   ;;  %v941_v4 = vld [vmem:[#allocation3] sm:$0xff]  ;;  %vm943_vm1 = vcmask 261120  }
  0x78   : > { %v911_v1 = vld [vmem:[%s879_s23] sm:$0xff]  ;;  %936 = vmatpush.msra.mxu0 %v912_v0 }
  0x79   : > { %2248 = vmatmul.msk.f32.vlgmr.msra.gmra.mxu0 %vm917_vm0, %v911_v1  ;;  %v2473_v2 = vld [vmem:[%s3698_s24] ss:$0 sm:$0xff] }
  0xf6   : > { %v938_v3 = vpop.f32.mrf.mxu0 }
  0xf7   : > { %v939_v5 = vadd.f32 %v2473_v2, %v938_v3 }
  0xf9   : > { %v942_v6 = vadd.f32 %v941_v4, %v939_v5 }
  0xfb   : > { %944 = vst.msk [vmem:[#allocation2] sm:$0xff] %vm943_vm1, %v942_v6 }
  0xfc PF: > { %vm948_vm2 = vcmask 261120   ;;  %v2863_v9 = vmov 32.0   ;;  %v2314_v21 = vld [vmem:[%s3209_s6 + $0x8] sm:$0xff]  ;;  %v2313_v22 = vld [vmem:[%s3209_s6] sm:$0xff]  ;;  %s3699_s21 = scalar_lea.vmem [#allocation6], %s3176_s9  ;;  %s3700_s23 = scalar_lea.vmem [#allocation8], %s3176_s9 }
  0xfd   : > { %2492 = vrcp.f32 %v2863_v9  ;;  %1016 = vmatpush.bf16.msra.mxu0 %v2314_v21  ;;  %v2484_v32 = vld [vmem:[%s3699_s21] ss:$0 sm:$0xff]  ;;  %s2864_s14 = smov 104   ;;  %s2865_s13 = smov 120   ;;  %vm1034_vm7 = vcmask 1047556   ;;  %vm1388_vm8 = vcmask 64512  }
  0xfe   : > { %v2485_v35 = vld [vmem:[%s3700_s23] ss:$0 sm:$0xff]  ;;  %s2866_s10 = smov 96   ;;  %s2867_s3 = smov 112   ;;  %v2868_v45 = vmov 1983009808  }
  0xff   : > { %v2486_v39 = vld [vmem:[%s887_s7] ss:$0 sm:$0xff]  ;;  %v1039_v46 = vunpack.c.l.s4 %v2868_v45  ;;  %v2869_v52 = vmov 1934713408   ;;  %s2870_s7 = smov 64   ;;  %s2871_s18 = smov 16  }
 0x100   : > { %v1063_v53 = vunpack.c.l.s4 %v2869_v52  ;;  %s2872_s17 = smov 8   ;;  %s2873_s11 = smov 24   ;;  %vm1752_vm9 = vcmask 130048   ;;  %vm1754_vm10 = vcmask 195584   ;;  %vm1901_vm14 = vcmask 523264  }
 0x101   : > { %1017 = vmatpush.bf16.msra.mxu0 %v2313_v22  ;;  %v3287_v51 = vunpack.c.0.s8 %v1039_v46  ;;  %s3705_s25 = scalar_lea.vmem [#allocation12], %s3176_s9  ;;  %p2305_p12 = scmp.ne.s32.totalorder %s2844_s1, 1 }
 0x102   : > { %v3247_v7 = vld [vmem:[#allocation2] sm:$0xff]  ;;  %v3294_v58 = vunpack.c.0.s8 %v1063_v53  ;;  %s3706_s24 = sld [smem:[#allocation47_spill]] (!%p2305_p12) }
 0x103   : > { %v949_v8 = vsel %vm948_vm2, %v3247_v7, 0.0  ;;  %v2493_v10 = vpop.eup %2492 }
 0x104   : > { %950 = vadd.xlane.f32.xlu0 %v949_v8  ;;  %v953_v11 = vmul.f32 32.0, %v2493_v10  ;;  %vm957_vm3 = vweird.f32 %v2493_v10 }
 0x106   : > { %v954_v12 = vsub.f32 1.0, %v953_v11 }
 0x108   : > { %v955_v13 = vmul.f32 %v2493_v10, %v954_v12 }
 0x10a   : > { %v956_v14 = vadd.f32 %v2493_v10, %v955_v13 }
 0x10c   : > { %v3251_v15 = vsel %vm957_vm3, %v2493_v10, %v956_v14 }
 0x177   : > { %v951_v16 = vpop.xlane.xlu0 %950 }
 0x178   : > { %v959_v17 = vmul.f32 %v3251_v15, %v951_v16 }
 0x17a   : > { %v960_v18 = vsub.f32 %v3247_v7, %v959_v17 }
 0x17c   : > { %v961_v19 = vmul.f32 %v960_v18, %v960_v18 }
 0x17e   : > { %v962_v20 = vsel %vm948_vm2, %v961_v19, 0.0 }
 0x17f   : > { %963 = vadd.xlane.f32.xlu0 %v962_v20 }
 0x1f2   : > { %v964_v23 = vpop.xlane.xlu0 %963 }
 0x1f3   : > { %v965_v24 = vmul.f32 %v964_v23, %v3251_v15 }
 0x1f5   : > { %v966_v25 = vadd.f32 1e-05, %v965_v24 }
 0x1f7   : > { %2494 = vrsqrt.f32 %v966_v25  ;;  %vm973_vm5 = vweird.f32 %v966_v25 }
 0x1fd   : > { %v2495_v26 = vpop.eup %2494 }
 0x1fe   : > { %v968_v27 = vmul.f32 %v2495_v26, %v966_v25  ;;  %vm974_vm4 = vweird.f32 %v2495_v26 }
 0x1ff   : > { %vm975_vm6 = vmor %vm973_vm5, %vm974_vm4 }
 0x200   : > { %v969_v28 = vmul.f32 %v2495_v26, %v968_v27 }
 0x202   : > { %v970_v29 = vmul.f32 0.5, %v969_v28 }
 0x204   : > { %v971_v30 = vsub.f32 1.5, %v970_v29 }
 0x206   : > { %v972_v31 = vmul.f32 %v2495_v26, %v971_v30 }
 0x208   : > { %v976_v33 = vsel %vm975_vm6, %v2495_v26, %v972_v31 }
 0x209   : > { %v977_v34 = vmul.f32 %v976_v33, %v960_v18 }
 0x20b   : > { %v981_v36 = vmul.f32 %v2484_v32, %v977_v34 }
 0x20d   : > { %v985_v37 = vadd.f32 %v2485_v35, %v981_v36 }
 0x20f   : > { %v986_v38 = vpack.c.bf16 %v985_v37, %v985_v37 }
 0x211   : > { %2257 = vmatmul.msk.bf16.vlgmr.msra.gmra.mxu0 %vm948_vm2, %v986_v38 }
 0x28e   : > { %v1019_v40 = vpop.f32.mrf.mxu0 }
 0x28f   : > { %v3269_v41 = vadd.f32 %v2486_v39, %v1019_v40 }
 0x291   : > { %1030 = vrot.lane.b32.xlu2 %v3269_v41, %s2864_s14  ;;  %1024 = vrot.lane.b32.xlu1 %v3269_v41, %s2865_s13  ;;  %v1036_v55 = vrot.slane %v3269_v41, 4  ;;  %s3707_s14 = sld [smem:[#allocation48_spill]] (!%p2305_p12) }
 0x296   : > { %v1021_v42 = vpop.f32.mrf.mxu0 }
 0x299   : > { %1144 = vrot.lane.b32.xlu2 %v3269_v41, %s2866_s10  ;;  %1027 = vrot.lane.b32.xlu1 %v3269_v41, %s2867_s3 }
 0x2eb   : > { %v3275_v43 = vpop.permute.xlu2 %1030 }
 0x2ec   : > { %1150 = vrot.lane.b32.xlu2 %v3275_v43, %s2866_s10  ;;  %v1046_v44 = vrot.slane %v3275_v43, 4 }
 0x303   : > { %v3279_v47 = vpop.permute.xlu1 %1024 }
 0x304   : > { %v1047_v48 = vsel %vm1034_vm7, %v1046_v44, %v3279_v47  ;;  %v1048_v49 = vrot.slane %v3279_v47, 4  ;;  %1146 = vrot.lane.b32.xlu0 %v3279_v47, %s2866_s10 }
 0x305   : > { %v1053_v56 = vperm.slane %v1047_v48, %v3287_v51 }
 0x306   : > { %v1049_v50 = vsel %vm1034_vm7, %v3275_v43, %v1048_v49 }
 0x307   : > { %v1057_v54 = vperm.slane %v1049_v50, %v3287_v51  ;;  %v1058_v0 = vrot.slane %v1053_v56, 4 }
 0x309   : > { %v1070_v61 = vrot.slane %v1057_v54, 4 }
 0x30b   : > { %v3292_v57 = vpop.permute.xlu1 %1027 }
 0x30c   : > { %v1033_v59 = vrot.slane %v3292_v57, 4  ;;  %v1037_v60 = vsel %vm1034_vm7, %v3292_v57, %v1036_v55  ;;  %1148 = vrot.lane.b32.xlu1 %v3292_v57, %s2866_s10 }
 0x30d   : > { %v1045_v62 = vperm.slane %v1037_v60, %v3287_v51 }
 0x30e   : > { %v1035_v63 = vsel %vm1034_vm7, %v1033_v59, %v3269_v41 }
 0x30f   : > { %v1041_v1 = vperm.slane %v1035_v63, %v3287_v51  ;;  %v1071_v2 = vsel %vm1034_vm7, %v1070_v61, %v1045_v62  ;;  %v1072_v3 = vrot.slane %v1045_v62, 4 }
 0x310   : > { %v1077_v4 = vperm.slane %v1071_v2, %v3294_v58 }
 0x311   : > { %v1059_v5 = vsel %vm1034_vm7, %v1058_v0, %v1041_v1  ;;  %v1060_v6 = vrot.slane %v1041_v1, 4  ;;  %v1073_v8 = vsel %vm1034_vm7, %v1057_v54, %v1072_v3 }
 0x312   : > { %v1065_v9 = vperm.slane %v1059_v5, %v3294_v58  ;;  %v1081_v10 = vperm.slane %v1073_v8, %v3294_v58  ;;  %v1086_v13 = vrot.slane %v1077_v4, 4 }
 0x313   : > { %v1061_v11 = vsel %vm1034_vm7, %v1053_v56, %v1060_v6  ;;  %v1145_v56 = vpop.permute.xlu2 %1144 }
 0x314   : > { %v1069_v12 = vperm.slane %v1061_v11, %v3294_v58  ;;  %v1088_v14 = vrot.slane %v1081_v10, 4  ;;  %v1082_v17 = vrot.slane %v1065_v9, 4  ;;  %v1087_v22 = vsel %vm1034_vm7, 0.0, %v1086_v13 }
 0x315   : > { %v1158_v2 = vrot.slane %v1145_v56, 4 }
 0x316   : > { %v1089_v16 = vsel %vm1034_vm7, 0.0, %v1088_v14  ;;  %v1084_v18 = vrot.slane %v1069_v12, 4  ;;  %v1101_v19 = vsel %vm1034_vm7, %v1088_v14, %v1077_v4  ;;  %v1083_v29 = vsel %vm1034_vm7, 0.0, %v1082_v17 }
 0x317   : > { %v1106_v20 = vrot.slane %v1089_v16, 4  ;;  %v1105_v21 = vperm.slane %v1101_v19, %v3287_v51 }
 0x318   : > { %v1085_v23 = vsel %vm1034_vm7, 0.0, %v1084_v18  ;;  %v1090_v24 = vsel %vm1034_vm7, %v1084_v18, %v1065_v9 }
 0x319   : > { %v1094_v25 = vperm.slane %v1090_v24, %v3287_v51  ;;  %v1095_v26 = vrot.slane %v1085_v23, 4  ;;  %v1107_v27 = vsel %vm1034_vm7, %v1106_v20, %v1087_v22  ;;  %v1126_v28 = vrot.slane %v1105_v21, 4 }
 0x31a   : > { %v1111_v30 = vperm.slane %v1107_v27, %v3287_v51 }
 0x31b   : > { %v1096_v31 = vsel %vm1034_vm7, %v1095_v26, %v1083_v29  ;;  %v1114_v32 = vrot.slane %v1094_v25, 4 }
 0x31c   : > { %v1100_v33 = vperm.slane %v1096_v31, %v3287_v51  ;;  %v1127_v34 = vsel %vm1034_vm7, %v1111_v30, %v1126_v28  ;;  %v1124_v35 = vrot.slane %v1111_v30, 4 }
 0x31d   : > { %v1135_v36 = vperm.slane %v1127_v34, %v3294_v58 }
 0x31e   : > { %v1115_v37 = vsel %vm1034_vm7, %v1100_v33, %v1114_v32  ;;  %v1112_v38 = vrot.slane %v1100_v33, 4  ;;  %v1125_v39 = vsel %vm1034_vm7, %v1124_v35, %v1105_v21 }
 0x31f   : > { %v1123_v40 = vperm.slane %v1115_v37, %v3294_v58  ;;  %v1140_v42 = vrot.slane %v1135_v36, 4  ;;  %v1131_v44 = vperm.slane %v1125_v39, %v3294_v58 }
 0x320   : > { %v1113_v45 = vsel %vm1034_vm7, %v1112_v38, %v1094_v25 }
 0x321   : > { %v3332_v46 = vsel %vm1034_vm7, %v1140_v42, %v1123_v40  ;;  %v1119_v48 = vperm.slane %v1113_v45, %v3294_v58  ;;  %v1136_v49 = vrot.slane %v1131_v44, 4  ;;  %v1142_v50 = vrot.slane %v1123_v40, 4 }
 0x323   : > { %v3336_v52 = vsel %vm1034_vm7, %v1136_v49, %v1119_v48  ;;  %v3339_v53 = vsel %vm1034_vm7, %v1135_v36, %v1142_v50  ;;  %v1138_v54 = vrot.slane %v1119_v48, 4 }
 0x325   : > { %v3342_v55 = vsel %vm1034_vm7, %v1131_v44, %v1138_v54 }
 0x346   : > { %v1151_v59 = vpop.permute.xlu2 %1150 }
 0x347   : > { %v1168_v62 = vrot.slane %v1151_v59, 4 }
 0x376   : > { %v1147_v60 = vpop.permute.xlu0 %1146 }
 0x377   : > { %v1170_v61 = vrot.slane %v1147_v60, 4  ;;  %v1169_v0 = vsel %vm1034_vm7, %v1168_v62, %v1147_v60 }
 0x378   : > { %v1175_v3 = vperm.slane %v1169_v0, %v3287_v51 }
 0x379   : > { %v1171_v63 = vsel %vm1034_vm7, %v1151_v59, %v1170_v61 }
 0x37a   : > { %v1179_v1 = vperm.slane %v1171_v63, %v3287_v51  ;;  %v1180_v11 = vrot.slane %v1175_v3, 4 }
 0x37c   : > { %v1192_v8 = vrot.slane %v1179_v1, 4 }
 0x37e   : > { %v1149_v4 = vpop.permute.xlu1 %1148 }
 0x37f   : > { %v1156_v5 = vrot.slane %v1149_v4, 4  ;;  %v1159_v6 = vsel %vm1034_vm7, %v1149_v4, %v1158_v2 }
 0x380   : > { %v1167_v9 = vperm.slane %v1159_v6, %v3287_v51 }
 0x381   : > { %v1157_v10 = vsel %vm1034_vm7, %v1156_v5, %v1145_v56 }
 0x382   : > { %v1163_v12 = vperm.slane %v1157_v10, %v3287_v51  ;;  %v1193_v13 = vsel %vm1034_vm7, %v1192_v8, %v1167_v9  ;;  %v1194_v14 = vrot.slane %v1167_v9, 4 }
 0x383   : > { %v1199_v16 = vperm.slane %v1193_v13, %v3294_v58 }
 0x384   : > { %v1181_v17 = vsel %vm1034_vm7, %v1180_v11, %v1163_v12  ;;  %v1182_v18 = vrot.slane %v1163_v12, 4  ;;  %v1195_v19 = vsel %vm1034_vm7, %v1179_v1, %v1194_v14 }
 0x385   : > { %v1187_v20 = vperm.slane %v1181_v17, %v3294_v58  ;;  %v1203_v21 = vperm.slane %v1195_v19, %v3294_v58  ;;  %v1208_v24 = vrot.slane %v1199_v16, 4 }
 0x386   : > { %v1183_v22 = vsel %vm1034_vm7, %v1175_v3, %v1182_v18 }
 0x387   : > { %v1191_v23 = vperm.slane %v1183_v22, %v3294_v58  ;;  %v1210_v25 = vrot.slane %v1203_v21, 4  ;;  %v1204_v26 = vrot.slane %v1187_v20, 4  ;;  %v1209_v32 = vsel %vm1034_vm7, 0.0, %v1208_v24 }
 0x389   : > { %v1206_v27 = vrot.slane %v1191_v23, 4  ;;  %v1211_v28 = vsel %vm1034_vm7, 0.0, %v1210_v25  ;;  %v1223_v29 = vsel %vm1034_vm7, %v1210_v25, %v1199_v16  ;;  %v1205_v39 = vsel %vm1034_vm7, 0.0, %v1204_v26 }
 0x38a   : > { %v1227_v30 = vperm.slane %v1223_v29, %v3287_v51  ;;  %v1228_v31 = vrot.slane %v1211_v28, 4 }
 0x38b   : > { %v1207_v33 = vsel %vm1034_vm7, 0.0, %v1206_v27  ;;  %v1212_v34 = vsel %vm1034_vm7, %v1206_v27, %v1187_v20 }
 0x38c   : > { %v1216_v35 = vperm.slane %v1212_v34, %v3287_v51  ;;  %v1217_v36 = vrot.slane %v1207_v33, 4  ;;  %v1229_v37 = vsel %vm1034_vm7, %v1228_v31, %v1209_v32  ;;  %v1248_v38 = vrot.slane %v1227_v30, 4 }
 0x38d   : > { %v1233_v40 = vperm.slane %v1229_v37, %v3287_v51 }
 0x38e   : > { %v1218_v42 = vsel %vm1034_vm7, %v1217_v36, %v1205_v39  ;;  %v1236_v44 = vrot.slane %v1216_v35, 4 }
 0x38f   : > { %v1222_v45 = vperm.slane %v1218_v42, %v3287_v51  ;;  %v1249_v48 = vsel %vm1034_vm7, %v1233_v40, %v1248_v38  ;;  %v1246_v49 = vrot.slane %v1233_v40, 4 }
 0x390   : > { %v1257_v50 = vperm.slane %v1249_v48, %v3294_v58 }
 0x391   : > { %v1237_v54 = vsel %vm1034_vm7, %v1222_v45, %v1236_v44  ;;  %v1234_v56 = vrot.slane %v1222_v45, 4  ;;  %v1247_v59 = vsel %vm1034_vm7, %v1246_v49, %v1227_v30 }
 0x392   : > { %v1245_v60 = vperm.slane %v1237_v54, %v3294_v58  ;;  %v1262_v61 = vrot.slane %v1257_v50, 4  ;;  %v1253_v62 = vperm.slane %v1247_v59, %v3294_v58 }
 0x393   : > { %v1235_v63 = vsel %vm1034_vm7, %v1234_v56, %v1216_v35 }
 0x394   : > { %v1263_v0 = vsel %vm1034_vm7, %v1262_v61, %v1245_v60  ;;  %v1241_v1 = vperm.slane %v1235_v63, %v3294_v58  ;;  %v1258_v2 = vrot.slane %v1253_v62, 4  ;;  %v1264_v3 = vrot.slane %v1245_v60, 4 }
 0x395   : > { %2262 = vmatpush.xpose.msk.msra.mxu3 %vm1388_vm8, %v1263_v0 }
 0x396   : > { %v1259_v4 = vsel %vm1034_vm7, %v1258_v2, %v1241_v1  ;;  %v1265_v5 = vsel %vm1034_vm7, %v1257_v50, %v1264_v3  ;;  %v1260_v6 = vrot.slane %v1241_v1, 4 }
 0x397   : > { %2258 = vmatpush.xpose.msk.msra.mxu2 %vm1388_vm8, %v1259_v4  ;;  %2264 = vmatpush.xpose.msk.msra.mxu1 %vm1388_vm8, %v1265_v5 }
 0x398   : > { %2263 = vmatmul.msk.f32.vlgmr.msra.gmra.mxu3 %vm1388_vm8, %v3332_v46  ;;  %v1261_v8 = vsel %vm1034_vm7, %v1253_v62, %v1260_v6 }
 0x39a   : > { %2259 = vmatmul.msk.f32.vlgmr.msra.gmra.mxu2 %vm1388_vm8, %v3336_v52  ;;  %2265 = vmatmul.msk.f32.vlgmr.msra.gmra.mxu1 %vm1388_vm8, %v3339_v53  ;;  %v2474_v53 = vpack.i.bf16 %v3279_v47, %v3269_v41 }
 0x39b   : > { %2260 = vmatpush.xpose.msk.msrb.mxu2 %vm1388_vm8, %v1261_v8 }
 0x3a2   : > { %2261 = vmatmul.msk.f32.vlgmr.msrb.gmra.mxu2 %vm1388_vm8, %v3342_v55  ;;  %v2479_v55 = vpack.i.bf16 %v3275_v43, %v3292_v57 }
 0x417   : > { %v1490_v9 = vpop.f32.mrf.mxu1 }
 0x418   : > { %v1502_v10 = vsel %vm1388_vm8, %v1490_v9, -inf }
 0x419   : > { %1503 = vmax.xlane.f32.xlu2 %v1502_v10 }
 0x41b   : > { %v1464_v11 = vpop.f32.mrf.mxu3 }
 0x41c   : > { %v1499_v13 = vsel %vm1388_vm8, %v1464_v11, -inf }
 0x41d   : > { %v1412_v12 = vpop.f32.mrf.mxu2 }
 0x41e   : > { %v1493_v46 = vsel %vm1388_vm8, %v1412_v12, -inf }
 0x41f   : > { %1494 = vmax.xlane.f32.xlu1 %v1493_v46 }
 0x421   : > { %1500 = vmax.xlane.f32.xlu2 %v1499_v13 }
 0x425   : > { %v1438_v14 = vpop.f32.mrf.mxu2 }
 0x426   : > { %v1496_v52 = vsel %vm1388_vm8, %v1438_v14, -inf }
 0x427   : > { %1497 = vmax.xlane.f32.xlu0 %v1496_v52 }
 0x438   : > { %2475 = vrot.lane.b32.xlu1 %v2474_v53, %s2870_s7 }
 0x439   : > { %2480 = vrot.lane.b32.xlu2 %v2479_v55, %s2870_s7 }
 0x48c   : > { %v1504_v16 = vpop.xlane.xlu2 %1503 }
 0x48d   : > { %v1508_v19 = vsub.f32 %v1490_v9, %v1504_v16 }
 0x48f   : > { %v1515_v21 = vmul.f32 1.442695, %v1508_v19 }
 0x492   : > { %v1495_v17 = vpop.xlane.xlu1 %1494 }
 0x493   : > { %v1505_v18 = vsub.f32 %v1412_v12, %v1495_v17 }
 0x494   : > { %v1501_v22 = vpop.xlane.xlu2 %1500 }
 0x495   : > { %v1509_v20 = vmul.f32 1.442695, %v1505_v18  ;;  %v1507_v41 = vsub.f32 %v1464_v11, %v1501_v22 }
 0x497   : > { %2496 = vpow2.f32 %v1509_v20  ;;  %v1513_v57 = vmul.f32 1.442695, %v1507_v41 }
 0x498   : > { %2498 = vpow2.f32 %v1515_v21 }
 0x49a   : > { %v1498_v23 = vpop.xlane.xlu0 %1497 }
 0x49b   : > { %v1506_v24 = vsub.f32 %v1438_v14, %v1498_v23 }
 0x49c   : > { %v2481_v27 = vpop.permute.xlu2 %2480 }
 0x49d   : > { %v3404_v25 = vpop.eup %2496  ;;  %v1511_v47 = vmul.f32 1.442695, %v1506_v24  ;;  %v2483_v31 = vunpack.i.h.bf16 %v2481_v27  ;;  %v2482_v32 = vunpack.i.l.bf16 %v2481_v27 }
 0x49e   : > { %v1517_v43 = vsel %vm1388_vm8, %v3404_v25, 0.0  ;;  %v3408_v26 = vpop.eup %2498 }
 0x49f   : > { %2500 = vpow2.f32 %v1511_v47  ;;  %1518 = vadd.xlane.f32.xlu0 %v1517_v43  ;;  %v1526_v29 = vsel %vm1388_vm8, %v3408_v26, 0.0  ;;  %v1290_v35 = vrot.slane %v2483_v31, 4  ;;  %v1278_v36 = vrot.slane %v2482_v32, 4 }
 0x4a0   : > { %2502 = vpow2.f32 %v1513_v57 }
 0x4a5   : > { %v3410_v28 = vpop.eup %2500 }
 0x4a6   : > { %v1520_v30 = vsel %vm1388_vm8, %v3410_v28, 0.0  ;;  %v3416_v34 = vpop.eup %2502 }
 0x4a7   : > { %1527 = vadd.xlane.f32.xlu0 %v1526_v29  ;;  %1521 = vadd.xlane.f32.xlu1 %v1520_v30  ;;  %v1523_v49 = vsel %vm1388_vm8, %v3416_v34, 0.0 }
 0x4aa   : > { %v2476_v33 = vpop.permute.xlu1 %2475 }
 0x4ab   : > { %v2478_v37 = vunpack.i.h.bf16 %v2476_v33  ;;  %v2477_v38 = vunpack.i.l.bf16 %v2476_v33 }
 0x4ad   : > { %v1291_v39 = vsel %vm1034_vm7, %v1290_v35, %v2478_v37  ;;  %v1292_v40 = vrot.slane %v2478_v37, 4  ;;  %v1279_v42 = vsel %vm1034_vm7, %v1278_v36, %v2477_v38  ;;  %v1280_v44 = vrot.slane %v2477_v38, 4 }
 0x4ae   : > { %v1297_v45 = vperm.slane %v1291_v39, %v3287_v51  ;;  %v1285_v48 = vperm.slane %v1279_v42, %v3287_v51 }
 0x4af   : > { %v1293_v50 = vsel %vm1034_vm7, %v2483_v31, %v1292_v40  ;;  %v1281_v54 = vsel %vm1034_vm7, %v2482_v32, %v1280_v44  ;;  %1524 = vadd.xlane.f32.xlu0 %v1523_v49 }
 0x4b0   : > { %v1301_v56 = vperm.slane %v1293_v50, %v3287_v51  ;;  %v1302_v59 = vrot.slane %v1297_v45, 4  ;;  %v1289_v60 = vperm.slane %v1281_v54, %v3287_v51  ;;  %v1304_v61 = vrot.slane %v1285_v48, 4 }
 0x4b2   : > { %v1314_v62 = vrot.slane %v1301_v56, 4  ;;  %v1303_v63 = vsel %vm1034_vm7, %v1302_v59, %v1285_v48  ;;  %v1305_v0 = vsel %vm1034_vm7, %v1297_v45, %v1304_v61  ;;  %v1316_v1 = vrot.slane %v1289_v60, 4 }
 0x4b3   : > { %v1309_v2 = vperm.slane %v1303_v63, %v3294_v58  ;;  %v1313_v3 = vperm.slane %v1305_v0, %v3294_v58 }
 0x4b4   : > { %v1315_v4 = vsel %vm1034_vm7, %v1314_v62, %v1289_v60  ;;  %v1317_v5 = vsel %vm1034_vm7, %v1301_v56, %v1316_v1 }
 0x4b5   : > { %v1321_v6 = vperm.slane %v1315_v4, %v3294_v58  ;;  %v1325_v8 = vperm.slane %v1317_v5, %v3294_v58  ;;  %v1326_v9 = vrot.slane %v1309_v2, 4  ;;  %v1328_v10 = vrot.slane %v1313_v3, 4 }
 0x4b7   : > { %v1329_v11 = vsel %vm1034_vm7, 0.0, %v1328_v10  ;;  %v1330_v12 = vrot.slane %v1321_v6, 4  ;;  %v1332_v46 = vrot.slane %v1325_v8, 4  ;;  %v1334_v14 = vsel %vm1034_vm7, %v1328_v10, %v1309_v2 }
 0x4b8   : > { %v1339_v13 = vrot.slane %v1329_v11, 4  ;;  %v1327_v52 = vsel %vm1034_vm7, 0.0, %v1326_v9  ;;  %v1338_v55 = vperm.slane %v1334_v14, %v3287_v51 }
 0x4b9   : > { %v1333_v53 = vsel %vm1034_vm7, 0.0, %v1332_v46  ;;  %v1345_v16 = vsel %vm1034_vm7, %v1332_v46, %v1321_v6  ;;  %v1331_v20 = vsel %vm1034_vm7, 0.0, %v1330_v12 }
 0x4ba   : > { %v1350_v17 = vrot.slane %v1333_v53, 4  ;;  %v1340_v18 = vsel %vm1034_vm7, %v1339_v13, %v1327_v52  ;;  %v1349_v19 = vperm.slane %v1345_v16, %v3287_v51  ;;  %v1358_v22 = vrot.slane %v1338_v55, 4 }
 0x4bb   : > { %v1344_v21 = vperm.slane %v1340_v18, %v3287_v51 }
 0x4bc   : > { %v1351_v23 = vsel %vm1034_vm7, %v1350_v17, %v1331_v20  ;;  %v1370_v24 = vrot.slane %v1349_v19, 4 }
 0x4bd   : > { %v1355_v41 = vperm.slane %v1351_v23, %v3287_v51  ;;  %v1356_v47 = vrot.slane %v1344_v21, 4  ;;  %v1359_v43 = vsel %vm1034_vm7, %v1344_v21, %v1358_v22 }
 0x4be   : > { %v1367_v29 = vperm.slane %v1359_v43, %v3294_v58 }
 0x4bf   : > { %v1357_v57 = vsel %vm1034_vm7, %v1356_v47, %v1338_v55  ;;  %v1368_v27 = vrot.slane %v1355_v41, 4  ;;  %v1371_v30 = vsel %vm1034_vm7, %v1355_v41, %v1370_v24 }
 0x4c0   : > { %v1363_v31 = vperm.slane %v1357_v57, %v3294_v58  ;;  %v1379_v32 = vperm.slane %v1371_v30, %v3294_v58  ;;  %v1386_v38 = vrot.slane %v1367_v29, 4 }
 0x4c1   : > { %v1369_v33 = vsel %vm1034_vm7, %v1368_v27, %v1349_v19 }
 0x4c2   : > { %v1375_v35 = vperm.slane %v1369_v33, %v3294_v58  ;;  %v1382_v36 = vrot.slane %v1363_v31, 4  ;;  %v1384_v37 = vrot.slane %v1379_v32, 4  ;;  %v1387_v45 = vsel %vm1034_vm7, %v1379_v32, %v1386_v38 }
 0x4c4   : > { %v1380_v39 = vrot.slane %v1375_v35, 4  ;;  %v1383_v40 = vsel %vm1034_vm7, %v1375_v35, %v1382_v36  ;;  %v1385_v42 = vsel %vm1034_vm7, %v1384_v37, %v1367_v29 }
 0x4c5   : > { %1578 = vmatpush.msrb.mxu3 %v1383_v40  ;;  %1601 = vmatpush.msrb.mxu1 %v1385_v42 }
 0x4c6   : > { %v1381_v44 = vsel %vm1034_vm7, %v1380_v39, %v1363_v31 }
 0x4c7   : > { %1555 = vmatpush.msra.mxu2 %v1381_v44 }
 0x4c9   : > { %1624 = vmatpush.msrb.mxu2 %v1387_v45 }
 0x512   : > { %v1519_v48 = vpop.xlane.xlu0 %1518 }
 0x513   : > { %2504 = vrcp.f32 %v1519_v48 }
 0x519   : > { %v2505_v49 = vpop.eup %2504 }
 0x51a   : > { %v1533_v50 = vmul.f32 %v2505_v49, %v3404_v25  ;;  %v1522_v54 = vpop.xlane.xlu1 %1521  ;;  %v1528_v56 = vpop.xlane.xlu0 %1527 }
 0x51b   : > { %2506 = vrcp.f32 %v1522_v54 }
 0x51c   : > { %2508 = vrcp.f32 %v1528_v56  ;;  %2266 = vmatmul.msk.f32.vlgmr.msra.gmra.mxu2 %vm1388_vm8, %v1533_v50 }
 0x521   : > { %v2507_v59 = vpop.eup %2506 }
 0x522   : > { %v2509_v60 = vpop.eup %2508  ;;  %v1534_v61 = vmul.f32 %v2507_v59, %v3410_v28  ;;  %v1525_v62 = vpop.xlane.xlu0 %1524 }
 0x523   : > { %v1536_v63 = vmul.f32 %v2509_v60, %v3408_v26  ;;  %2510 = vrcp.f32 %v1525_v62 }
 0x524   : > { %2267 = vmatmul.msk.f32.vlgmr.msrb.gmra.mxu3 %vm1388_vm8, %v1534_v61 }
 0x525   : > { %2269 = vmatmul.msk.f32.vlgmr.msrb.gmra.mxu2 %vm1388_vm8, %v1536_v63 }
 0x529   : > { %v2511_v0 = vpop.eup %2510 }
 0x52a   : > { %v1535_v25 = vmul.f32 %v2511_v0, %v3416_v34 }
 0x52c   : > { %2268 = vmatmul.msk.f32.vlgmr.msrb.gmra.mxu1 %vm1388_vm8, %v1535_v25 }
 0x59f   : > { %v1557_v1 = vpop.f32.mrf.mxu2 }
 0x5a0   : > { %v1631_v3 = vrot.slane %v1557_v1, 4 }
 0x5a7   : > { %v1580_v2 = vpop.f32.mrf.mxu3 }
 0x5a8   : > { %v1643_v4 = vrot.slane %v1580_v2, 4  ;;  %v1626_v5 = vpop.f32.mrf.mxu2 }
 0x5a9   : > { %v1641_v6 = vrot.slane %v1626_v5, 4  ;;  %v1603_v28 = vpop.f32.mrf.mxu1 }
 0x5aa   : > { %v1644_v8 = vsel %vm1034_vm7, %v1626_v5, %v1643_v4  ;;  %v1629_v26 = vrot.slane %v1603_v28, 4  ;;  %v1632_v9 = vsel %vm1034_vm7, %v1603_v28, %v1631_v3  ;;  %v2315_v28 = vld [vmem:[%s3218_s29] sm:$0xff] }
 0x5ab   : > { %v1642_v10 = vsel %vm1034_vm7, %v1641_v6, %v1580_v2  ;;  %v1652_v11 = vperm.slane %v1644_v8, %v3287_v51  ;;  %v1640_v34 = vperm.slane %v1632_v9, %v3287_v51  ;;  %v2316_v6 = vld [vmem:[%s3218_s29 + $0x8] sm:$0xff]  ;;  %s3704_s29 = scalar_lea.vmem [#allocation11], %s3176_s9 }
 0x5ac   : > { %v1648_v12 = vperm.slane %v1642_v10, %v3287_v51  ;;  %v1630_v46 = vsel %vm1034_vm7, %v1629_v26, %v1557_v1  ;;  %1786 = vmatpush.bf16.msra.mxu3 %v2316_v6 }
 0x5ad   : > { %v1665_v13 = vrot.slane %v1652_v11, 4  ;;  %v1636_v14 = vperm.slane %v1630_v46, %v3287_v51  ;;  %v1667_v52 = vrot.slane %v1640_v34, 4 }
 0x5ae   : > { %v1653_v53 = vrot.slane %v1648_v12, 4 }
 0x5af   : > { %v1655_v55 = vrot.slane %v1636_v14, 4  ;;  %v1666_v16 = vsel %vm1034_vm7, %v1665_v13, %v1640_v34  ;;  %v1668_v17 = vsel %vm1034_vm7, %v1652_v11, %v1667_v52 }
 0x5b0   : > { %v1654_v18 = vsel %vm1034_vm7, %v1653_v53, %v1636_v14  ;;  %v1672_v19 = vperm.slane %v1666_v16, %v3294_v58  ;;  %v1676_v20 = vperm.slane %v1668_v17, %v3294_v58  ;;  %1787 = vmatpush.bf16.msra.mxu3 %v2315_v28 }
 0x5b1   : > { %v1656_v21 = vsel %vm1034_vm7, %v1648_v12, %v1655_v55  ;;  %v1660_v22 = vperm.slane %v1654_v18, %v3294_v58  ;;  %v2487_v12 = vld [vmem:[%s895_s4] ss:$0 sm:$0xff] }
 0x5b2   : > { %v1664_v23 = vperm.slane %v1656_v21, %v3294_v58  ;;  %v1681_v24 = vrot.slane %v1672_v19, 4  ;;  %v1683_v41 = vrot.slane %v1676_v20, 4  ;;  %v2318_v20 = vld [vmem:[%s3227_s15 + $0x8] sm:$0xff]  ;;  %v2317_v21 = vld [vmem:[%s3227_s15] sm:$0xff]  ;;  %s3703_s15 = scalar_lea.vmem [#allocation9], %s3176_s9 }
 0x5b3   : > { %v1677_v47 = vrot.slane %v1660_v22, 4  ;;  %1856 = vmatpush.bf16.msrb.mxu0 %v2318_v20 }
 0x5b4   : > { %v1679_v43 = vrot.slane %v1664_v23, 4  ;;  %v1684_v57 = vsel %vm1034_vm7, 0.0, %v1683_v41  ;;  %v1696_v27 = vsel %vm1034_vm7, %v1683_v41, %v1672_v19  ;;  %v1682_v32 = vsel %vm1034_vm7, 0.0, %v1681_v24  ;;  %v2321_v24 = vld [vmem:[%s3233_s16 + $0x10] sm:$0xff] }
 0x5b5   : > { %v1700_v29 = vperm.slane %v1696_v27, %v3287_v51  ;;  %v1701_v30 = vrot.slane %v1684_v57, 4  ;;  %v1678_v39 = vsel %vm1034_vm7, 0.0, %v1677_v47 }
 0x5b6   : > { %v1680_v31 = vsel %vm1034_vm7, 0.0, %v1679_v43  ;;  %v1685_v33 = vsel %vm1034_vm7, %v1679_v43, %v1660_v22  ;;  %v2322_v22 = vld [vmem:[%s3233_s16 + $0x18] sm:$0xff] }
 0x5b7   : > { %v1702_v35 = vsel %vm1034_vm7, %v1701_v30, %v1682_v32  ;;  %v1689_v36 = vperm.slane %v1685_v33, %v3287_v51  ;;  %v1690_v37 = vrot.slane %v1680_v31, 4  ;;  %v1721_v38 = vrot.slane %v1700_v29, 4  ;;  %1857 = vmatpush.bf16.msrb.mxu0 %v2317_v21  ;;  %1909 = vmatpush.bf16.msra.mxu1 %v2322_v22  ;;  %v2489_v33 = vld [vmem:[%s3704_s29] ss:$0 sm:$0xff] }
 0x5b8   : > { %v1706_v40 = vperm.slane %v1702_v35, %v3287_v51 }
 0x5b9   : > { %v1691_v42 = vsel %vm1034_vm7, %v1690_v37, %v1678_v39  ;;  %v1709_v44 = vrot.slane %v1689_v36, 4  ;;  %v2319_v39 = vld [vmem:[%s3233_s16] sm:$0xff] }
 0x5ba   : > { %v1695_v45 = vperm.slane %v1691_v42, %v3287_v51  ;;  %v1722_v48 = vsel %vm1034_vm7, %v1706_v40, %v1721_v38  ;;  %v1719_v49 = vrot.slane %v1706_v40, 4  ;;  %v2320_v38 = vld [vmem:[%s3233_s16 + $0x8] sm:$0xff]  ;;  %v2490_v40 = vld [vmem:[%s3705_s25] ss:$0 sm:$0xff] }
 0x5bb   : > { %v1730_v50 = vperm.slane %v1722_v48, %v3294_v58  ;;  %1910 = vmatpush.bf16.msra.mxu1 %v2321_v24 }
 0x5bc   : > { %v1710_v54 = vsel %vm1034_vm7, %v1695_v45, %v1709_v44  ;;  %v1707_v56 = vrot.slane %v1695_v45, 4  ;;  %v1720_v59 = vsel %vm1034_vm7, %v1719_v49, %v1700_v29 }
 0x5bd   : > { %v1718_v60 = vperm.slane %v1710_v54, %v3294_v58  ;;  %v1735_v61 = vrot.slane %v1730_v50, 4  ;;  %v1726_v62 = vperm.slane %v1720_v59, %v3294_v58 }
 0x5be   : > { %v1708_v63 = vsel %vm1034_vm7, %v1707_v56, %v1689_v36 }
 0x5bf   : > { %v1736_v51 = vsel %vm1034_vm7, %v1735_v61, %v1718_v60  ;;  %v1714_v0 = vperm.slane %v1708_v63, %v3294_v58  ;;  %v1731_v25 = vrot.slane %v1726_v62, 4  ;;  %v1737_v4 = vrot.slane %v1718_v60, 4  ;;  %1911 = vmatpush.bf16.msra.mxu1 %v2320_v38 }
 0x5c0   : > { %1744 = vrot.lane.b32.xlu0 %v1736_v51, %s2871_s18 }
 0x5c1   : > { %v1733_v1 = vrot.slane %v1714_v0, 4  ;;  %v1732_v2 = vsel %vm1034_vm7, %v1731_v25, %v1714_v0  ;;  %v1738_v5 = vsel %vm1034_vm7, %v1730_v50, %v1737_v4  ;;  %v2491_v50 = vld [vmem:[%s774_s27] ss:$0 sm:$0xff] }
 0x5c3   : > { %v1734_v3 = vsel %vm1034_vm7, %v1726_v62, %v1733_v1  ;;  %1912 = vmatpush.bf16.msra.mxu1 %v2319_v39 }
 0x5c4   : > { %1740 = vrot.lane.b32.xlu2 %v1734_v3, %s2872_s17 }
 0x5cc   : > { %1748 = vrot.lane.b32.xlu2 %v1738_v5, %s2873_s11 }
 0x61e   : > { %v1741_v58 = vpop.permute.xlu2 %1740 }
 0x61f   : > { %v1751_v8 = vsel %vm1388_vm8, %v1732_v2, %v1741_v58 }
 0x626   : > { %v1749_v9 = vpop.permute.xlu2 %1748 }
 0x632   : > { %v1745_v26 = vpop.permute.xlu0 %1744 }
 0x633   : > { %v1753_v10 = vsel %vm1752_vm9, %v1751_v8, %v1745_v26 }
 0x634   : > { %v1755_v11 = vsel %vm1754_vm10, %v1753_v10, %v1749_v9 }
 0x635   : > { %v1756_v34 = vpack.c.bf16 %v1755_v11, %v1755_v11 }
 0x637   : > { %2278 = vmatmul.msk.bf16.vlgmr.msra.gmra.mxu3 %vm948_vm2, %v1756_v34 }
 0x6ba   : > { %v1789_v46 = vpop.f32.mrf.mxu3 }
 0x6bb   : > { %v1790_v13 = vadd.f32 %v2487_v12, %v1789_v46 }
 0x6bd   : > { %v1793_v14 = vadd.f32 %v1790_v13, %v3247_v7 }
 0x6bf   : > { %v1796_v52 = vsel %vm948_vm2, %v1793_v14, 0.0 }
 0x6c0   : > { %1797 = vadd.xlane.f32.xlu2 %v1796_v52 }
 0x6c2   : > { %v1791_v53 = vpop.f32.mrf.mxu3 }
 0x733   : > { %v1798_v55 = vpop.xlane.xlu2 %1797 }
 0x734   : > { %v1799_v16 = vmul.f32 %v1798_v55, %v3251_v15 }
 0x736   : > { %v1800_v17 = vsub.f32 %v1793_v14, %v1799_v16 }
 0x738   : > { %v1801_v18 = vmul.f32 %v1800_v17, %v1800_v17 }
 0x73a   : > { %v1802_v19 = vsel %vm948_vm2, %v1801_v18, 0.0 }
 0x73b   : > { %1803 = vadd.xlane.f32.xlu0 %v1802_v19 }
 0x7ae   : > { %v1804_v23 = vpop.xlane.xlu0 %1803 }
 0x7af   : > { %v1805_v7 = vmul.f32 %v1804_v23, %v3251_v15  ;;  %v2488_v15 = vld [vmem:[%s3703_s15] ss:$0 sm:$0xff] }
 0x7b1   : > { %v1806_v41 = vadd.f32 1e-05, %v1805_v7 }
 0x7b3   : > { %2512 = vrsqrt.f32 %v1806_v41  ;;  %vm1813_vm12 = vweird.f32 %v1806_v41 }
 0x7b9   : > { %v2513_v47 = vpop.eup %2512 }
 0x7ba   : > { %v1808_v43 = vmul.f32 %v2513_v47, %v1806_v41  ;;  %vm1814_vm11 = vweird.f32 %v2513_v47 }
 0x7bb   : > { %vm1815_vm13 = vmor %vm1813_vm12, %vm1814_vm11 }
 0x7bc   : > { %v1809_v57 = vmul.f32 %v2513_v47, %v1808_v43 }
 0x7be   : > { %v1810_v27 = vmul.f32 0.5, %v1809_v57 }
 0x7c0   : > { %v1811_v29 = vsub.f32 1.5, %v1810_v27 }
 0x7c2   : > { %v1812_v30 = vmul.f32 %v2513_v47, %v1811_v29 }
 0x7c4   : > { %v1816_v31 = vsel %vm1815_vm13, %v2513_v47, %v1812_v30 }
 0x7c5   : > { %v1817_v32 = vmul.f32 %v1816_v31, %v1800_v17 }
 0x7c7   : > { %v1821_v35 = vmul.f32 %v2488_v15, %v1817_v32 }
 0x7c9   : > { %v1825_v36 = vadd.f32 %v2489_v33, %v1821_v35 }
 0x7cb   : > { %v1826_v37 = vpack.c.bf16 %v1825_v36, %v1825_v36 }
 0x7cd   : > { %2287 = vmatmul.msk.bf16.vlgmr.msrb.gmra.mxu0 %vm948_vm2, %v1826_v37 }
 0x84a   : > { %v1859_v42 = vpop.f32.mrf.mxu0 }
 0x84b   : > { %v1860_v44 = vadd.f32 %v2490_v40, %v1859_v42 }
 0x84d   : > { %v1863_v45 = vmax.f32 %v1860_v44, 0.0 }
 0x84f   : > { %v1864_v48 = vpack.c.bf16 %v1863_v45, %v1863_v45 }
 0x851   : > { %2304 = vmatmul.msk.bf16.vlgmr.msra.gmra.mxu1 %vm1901_vm14, %v1864_v48 }
 0x852   : > { %v1861_v49 = vpop.f32.mrf.mxu0 }
 0x8ce   : > { %v1914_v54 = vpop.f32.mrf.mxu1 }
 0x8cf   : > { %v1915_v56 = vadd.f32 %v2491_v50, %v1914_v54 }
 0x8d1   : > { %v1918_v59 = vadd.f32 %v1915_v56, %v1793_v14 }
 0x8d2   : > { %1923 = sbr.rel (%p2305_p12) target bundleno = 2411 (0x96b), region = 128 }
 0x8d3   : > { %1919 = vst.msk [vmem:[#allocation2] sm:$0xff] %vm948_vm2, %v1918_v59 }
 0x8d6   : > { %v1916_v60 = vpop.f32.mrf.mxu1 }
 0x8d7   : > { %v1942_v61 = vld [vmem:[%s3706_s24 + $0x18] sm:$0xff]  ;;  %v1941_v62 = vld [vmem:[%s3706_s24 + $0x10] sm:$0xff]  ;;  %v1924_v63 = vsel %vm948_vm2, %v1918_v59, 0.0  ;;  %v2874_v0 = vmov 8.0   ;;  %v1940_v25 = vld [vmem:[%s3706_s24 + $0x8] sm:$0xff]  ;;  %vm1967_vm0 = vcmask 73728  }
 0x8d8   : > { %1959 = vmatpush.msra.mxu0 %v1942_v61  ;;  %v1925_v51 = vrot.slane %v1924_v63, 4  ;;  %2514 = vrcp.f32 %v2874_v0  ;;  %v1939_v2 = vld [vmem:[%s3706_s24] sm:$0xff] }
 0x8d9   : > { %v1943_v34 = vld [vmem:[%s3707_s14] sm:$0x1] }
 0x8da   : > { %1960 = vmatpush.msra.mxu0 %v1941_v62  ;;  %v1926_v1 = vadd.f32 %v1925_v51, %v1924_v63 }
 0x8dc   : > { %1961 = vmatpush.msra.mxu0 %v1940_v25  ;;  %v1927_v3 = vrot.slane %v1926_v1, 2 }
 0x8de   : > { %v2515_v4 = vpop.eup %2514  ;;  %1962 = vmatpush.msra.mxu0 %v1939_v2  ;;  %v1928_v5 = vadd.f32 %v1927_v3, %v1926_v1 }
 0x8df   : > { %v1932_v6 = vmul.f32 8.0, %v2515_v4  ;;  %vm1936_vm15 = vweird.f32 %v2515_v4 }
 0x8e0   : > { %v1929_v28 = vrot.slane %v1928_v5, 1 }
 0x8e1   : > { %v1933_v58 = vsub.f32 1.0, %v1932_v6 }
 0x8e2   : > { %v1930_v26 = vadd.f32 %v1929_v28, %v1928_v5 }
 0x8e3   : > { %v1934_v8 = vmul.f32 %v2515_v4, %v1933_v58 }
 0x8e5   : > { %v1935_v9 = vadd.f32 %v2515_v4, %v1934_v8 }
 0x8e7   : > { %v1937_v10 = vsel %vm1936_vm15, %v2515_v4, %v1935_v9 }
 0x8e8   : > { %v1938_v11 = vmul.f32 %v1937_v10, %v1930_v26 }
 0x8ea   : > { %2306 = vmatmul.msk.f32.vlgmr.msra.gmra.mxu0 %vm948_vm2, %v1938_v11 }
 0x967   : > { %v1964_v12 = vpop.f32.mrf.mxu0 }
 0x968   : > { %v1965_v46 = vadd.f32 %v1964_v12, %v1943_v34 }
 0x96a   : > { %1968 = vst.msk [vmem:[%s3238_s19] sm:$0x1] %vm1967_vm0, %v1965_v46 }
 0x96b PF: > { %s3708_s3 = sld [smem:[#allocation49_spill]]  ;;  %s1980_s18 = sshll.u32 %s3238_s19, 4  ;;  %s1981_s18 = int_to_ptr.vmem [resolvable:$true] %s1980_s18 }
 0x96c   : > { %s3709_s11 = sand.u32 1, %s2824_s28  }
 0x96d   : > { %s1970_s22 = scalar_lea.sflag [#allocation5], %s3709_s11 }
 0x971   : > { %s1978_s7 = scalar_lea.hbm %s3708_s3, %s2848_s20  ;;  %s2746_s25 = scalar_lea.hbm %s3708_s3, 2 }
 0x972   : > { %s1982_s17 = sshll.u32 %s1978_s7, 4  ;;  %s1983_s17 = int_to_ptr.hbm [resolvable:$true] %s1982_s17 }
 0x973   : > { %s2740_s5 = sshra.s32 %s1983_s17, 4  ;;  %s2741_s5 = int_to_ptr.hbm [resolvable:$true] %s2740_s5 }
 0x974   : > { %s2742_s8 = scalar_lea.hbm %s2741_s5, 1  ;;  %p2747_p4 = scmp.lt.s32.totalorder %s2741_s5, %s3708_s3 }
 0x975   : > { %p2743_p13 = scmp.ne.s32.totalorder %s2741_s5, %s2742_s8  ;;  %p2748_p5 = scmp.lt.s32.totalorder %s2746_s25, %s2742_s8 }
 0x977   : > { %p2744_p0 = pnand %p2743_p13, %p3117_p2  ;;  %p2749_p7 = por %p2748_p5, %p2747_p4 }
 0x979   : > { %p2745_p1 = pneg %p2744_p0 }
 0x97b   : > { %p2750_p9 = pnand %p2749_p7, %p2745_p1 }
 0x97d   : > { %2753 = shalt.err (!%p2750_p9)
}
 0x97e   : > { %2339 = dma.vmem_to_hbm [thread:$0]  (%p3117_p2), %s1981_s18, 16, %s1983_s17, %s1970_s22  }
 0x97f PF: > { %s3710_s20 = sld [smem:[#allocation21_spill]]  ;;  %p2371_p11 = scmp.ge.s32.totalorder %s2860_s2, 2 }
 0x981   : > { %p2365_p6 = pnand %p2371_p11, %p3121_p3 }
 0x983   : > { %p2366_p8 = pneg %p2365_p6 }
 0x985   : > { %s1994_s21 = sand.u32 1, %s3710_s20  }
 0x986   : > { %s1995_s23 = scalar_lea.sflag [#allocation5], %s1994_s21 }
 0x987   : > { %2815 = dma.done.wait (%p2366_p8), %s1995_s23, 16  }
 0x988   : > { %2817 = vsyncadd (%p2366_p8), %s1995_s23, 4294967280  ;;  %s41_s2 = sadd.s32 1, %s2860_s2   ;;  %s3712_s9 = sld [smem:[#allocation22_spill]] }
 0x989   : > { %p38_p10 = scmp.ge.s32.totalorder %s41_s2, 6   ;;  %s3713_s29 = sld [smem:[#allocation30_spill]] }
 0x98a   : > { %s3714_s1 = sld [smem:[#allocation23_spill]]  ;;  %s3720_s27 = smov %s2824_s28 }
 0x98b   : > { %s3715_s19 = sld [smem:[#allocation27_spill]]  ;;  %s3722_s30 = smov %s2836_s0 }
 0x98c   : > { %s3716_s6 = sld [smem:[#allocation24_spill]] }
 0x98d   : > { %s3717_s20 = sld [smem:[#allocation25_spill]] }
 0x98e   : > { %s3718_s21 = sld [smem:[#allocation26_spill]]  ;;  %s3721_s28 = smov %s3712_s9 }
 0x98f   : > { %s3719_s22 = sld [smem:[#allocation28_spill]]  ;;  %40 = sbr.rel (!%p38_p10) target bundleno = 34 (0x22), region = 230 }
 0x990   : > { %s3723_s0 = smov %s3714_s1 }
 0x992   : > { %s3724_s1 = smov %s3716_s6 }
 0x994   :  { %2000 = vsyncpa [#allocation4], 1 }
 0x995   :  { %2002 = vsyncpa [#allocation4 + $0x1], 1 }
 0x996   :  { %2003 = vsyncpa [#allocation7], 1 }
 0x997   :  { %2005 = vsyncpa [#allocation7 + $0x1], 1 }
 0x998   :  { %2006 = vsyncpa [#allocation10], 1 }
 0x999   :  { %2008 = vsyncpa [#allocation10 + $0x1], 1 }
 0x99a   :  { %2009 = vsyncpa [#allocation13], 1 }
 0x99b   :  { %2011 = vsyncpa [#allocation13 + $0x1], 1 }
 0x99c   :  { %2012 = vsyncpa [#allocation5], 1 }
 0x99d   :  { %2014 = vsyncpa [#allocation5 + $0x1], 1 }

</bundles_post_ra>
